<compile_context>
chip_gen: v6e
topology: v6e:2x2x1
jax: 0.10.0
libtpu: 0.0.40
codegen_flags: <defaults>
</compile_context>

<pallas_src>
import jax
import jax.numpy as jnp
from jax import lax
from jax.experimental import pallas as pl
from jax.experimental.pallas import tpu as pltpu

KH = KW = 5
PAD = 2


def _make_kernel(H, W):
    HW = H * W
    ZP = 2 * W + PAD          # max |flat shift| of a 5x5 tap = 2*W + 2
    L = HW + 2 * ZP           # flat padded pooled-map length

    def kernel(w_ref, mask_ref, x_ref, out_ref, pad_ref):
        # w_ref   : SMEM (50,) f32 flat conv weight, index = c*25 + kh*5 + kw (c0=max map, c1=mean map)
        # mask_ref: VMEM (5, HW) f32 column-validity masks per kw (0/1)
        # x_ref   : VMEM (NB, C, HW) lane-dense input block
        # out_ref : VMEM (NB, C, HW)
        # pad_ref : VMEM (NB, 2, L) f32 zero-padded flat pooled maps
        NB, C, _ = x_ref.shape

        xv = x_ref[...]                                        # (NB, C, HW)
        xf = xv.astype(jnp.float32)

        # ChannelPool: fused single pass, keepdims keeps the natural (NB, 1, HW) layout.
        mx = jnp.max(xf, axis=1, keepdims=True)                # (NB, 1, HW)
        mn = jnp.sum(xf, axis=1, keepdims=True) * (1.0 / C)    # (NB, 1, HW)

        # Build the zero-padded flat pooled maps: zero only the two ZP-wide halos, write the
        # interior once (no full-buffer zero, no large masked stores).
        halo = jnp.zeros((NB, 2, ZP), jnp.float32)
        pad_ref[:, :, 0:ZP] = halo
        pad_ref[:, :, ZP + HW:L] = halo
        pad_ref[:, 0:1, ZP:ZP + HW] = mx
        pad_ref[:, 1:2, ZP:ZP + HW] = mn

        # 5x5 conv, stride 1, pad 2, no bias — evaluated in flat H*W layout.
        # Tap (kh, kw): source flat index i + (kh-2)*W + (kw-2).  Rows out of [0, H) land in the
        # zero halo; columns that wrap across a row boundary are zeroed by the per-kw lane mask.
        masks_v = mask_ref[...]                                # (5, HW) hoisted load
        mrows = [masks_v[kw:kw + 1, :] for kw in range(KW)]    # (1, HW) each, hoisted slices

        acc = jnp.zeros((NB, 1, HW), jnp.float32)
        for kh in range(KH):
            row_off = ZP + (kh - PAD) * W
            for kw in range(KW):
                off = row_off + (kw - PAD)
                a = pad_ref[:, 0:1, off:off + HW]              # (NB, 1, HW) max-map window
                b = pad_ref[:, 1:2, off:off + HW]              # (NB, 1, HW) mean-map window
                tap = w_ref[kh * KW + kw] * a + w_ref[KH * KW + kh * KW + kw] * b
                if kw != PAD:                                  # dw == 0 never wraps a column
                    tap = tap * mrows[kw]
                acc = acc + tap

        scale = jax.nn.sigmoid(acc)                            # (NB, 1, HW) f32, EUP
        # Gate: sublane broadcast over C, one dense lane-aligned store of the full block.
        out_ref[...] = (xf * scale).astype(out_ref.dtype)

    return kernel


def spatial_attn(x, w, *, vmem_budget_bytes=32 * 1024 * 1024, target_grid_steps=8):
    """x: (N, C, H, W); w: (1, 2, 5, 5) OIHW conv weight (no bias). Returns x * sigmoid(conv(pool(x)))."""
    N, C, H, W = x.shape
    HW = H * W
    ZP = 2 * W + PAD
    L = HW + 2 * ZP

    w_flat = w.reshape(-1).astype(jnp.float32)                 # (50,): [max-map 25 taps, mean-map 25 taps]

    # Per-kw column-validity masks in flat layout: mask[kw, i] = 1 iff 0 <= (i % W) + (kw-2) < W.
    col = jnp.arange(HW, dtype=jnp.int32) % W
    dws = jnp.arange(-PAD, PAD + 1, dtype=jnp.int32)
    masks = ((col[None, :] + dws[:, None] >= 0)
             & (col[None, :] + dws[:, None] < W)).astype(jnp.float32)   # (5, HW)

    x_flat = x.reshape(N, C, HW)                               # free metadata reshape (contiguous NCHW)

    # --- tile-aware VMEM accounting: (8,128) tiles, dtype-packed sublanes ---
    itemsize = x.dtype.itemsize
    sub = {4: 8, 2: 16, 1: 32}.get(itemsize, 8)
    rup = lambda a, m: ((a + m - 1) // m) * m
    block_plane = rup(C, sub) * rup(HW, 128) * itemsize        # one (C, HW) plane as actually tiled
    pad_plane = rup(2, 8) * rup(L, 128) * 4                    # (2, L) f32 scratch plane as tiled
    temp_plane = rup(C, 8) * rup(HW, 128) * 4                  # live f32 temporaries (xf etc.)
    # per sample per step: double-buffered in + double-buffered out + scratch + temps
    per_sample = 4 * block_plane + pad_plane + 2 * temp_plane

    # nb: fill the budget, but keep >= target_grid_steps grid steps so the pipeline has work to
    # overlap and the "parallel" batch axis shards across both v7x TensorCores.
    nb = int(max(1, min(N,
                        vmem_budget_bytes // max(1, per_sample),
                        pl.cdiv(N, target_grid_steps))))
    grid = (pl.cdiv(N, nb),)

    cost = pl.CostEstimate(
        flops=int(N) * HW * (3 * C + 4 * KH * KW + 10),
        transcendentals=int(N) * HW,
        bytes_accessed=2 * int(N) * C * HW * itemsize + masks.size * 4 + w_flat.size * 4,
    )

    out_flat = pl.pallas_call(
        _make_kernel(H, W),
        out_shape=jax.ShapeDtypeStruct((N, C, HW), x.dtype),
        grid=grid,
        in_specs=[
            pl.BlockSpec(memory_space=pltpu.MemorySpace.SMEM),         # (50,) conv taps (scalar reads)
            pl.BlockSpec((KW, HW), lambda b: (0, 0)),                  # column masks (copied once)
            pl.BlockSpec((nb, C, HW), lambda b: (b, 0, 0)),            # lane-dense x stream
        ],
        out_specs=pl.BlockSpec((nb, C, HW), lambda b: (b, 0, 0)),
        scratch_shapes=[pltpu.VMEM((nb, 2, L), jnp.float32)],
        compiler_params=pltpu.CompilerParams(
            dimension_semantics=("parallel",),
            vmem_limit_bytes=48 * 1024 * 1024,                         # <= physical on v5e/v6e/v7x
        ),
        cost_estimate=cost,
    )(w_flat, masks, x_flat)

    return out_flat.reshape(N, C, H, W)


def spatial_attn_reference(x, w):
    """Pure-JAX reference mirroring the PyTorch forward."""
    mx = jnp.max(x, axis=1, keepdims=True)
    mn = jnp.mean(x, axis=1, keepdims=True)
    pooled = jnp.concatenate([mx, mn], axis=1)                 # (N, 2, H, W)
    conv = lax.conv_general_dilated(
        pooled, w, window_strides=(1, 1), padding=((PAD, PAD), (PAD, PAD)),
        dimension_numbers=("NCHW", "OIHW", "NCHW"))
    return x * jax.nn.sigmoid(conv)


if __name__ == "__main__":
    key = jax.random.PRNGKey(0)
    kx, kw_ = jax.random.split(key)

    N, C, H, W = 2, 4, 16, 16
    x = jax.random.normal(kx, (N, C, H, W), dtype=jnp.float32)
    # Deterministic synthetic conv weight, shape matches nn.Conv2d(2, 1, 5, bias=False).
    w = 0.1 * jax.random.normal(kw_, (1, 2, KH, KW), dtype=jnp.float32)

    out = spatial_attn(x, w)
    jax.block_until_ready(out)
    ref = spatial_attn_reference(x, w)
    assert out.shape == (N, C, H, W)
    assert jnp.allclose(out, ref, atol=1e-5, rtol=1e-5), "mismatch vs reference"

    # Ragged-N / multi-step grid check: nb=2 over N=3 exercises the masked final block.
    x2 = jax.random.normal(jax.random.PRNGKey(1), (3, C, H, W), dtype=jnp.float32)
    out2 = spatial_attn(x2, w, target_grid_steps=2)
    jax.block_until_ready(out2)
    ref2 = spatial_attn_reference(x2, w)
    assert jnp.allclose(out2, ref2, atol=1e-5, rtol=1e-5), "mismatch vs reference (ragged N)"

    print("KERNEL_OK")
</pallas_src>

<mosaic_0001>
module attributes {stable_mosaic.version = 11 : i64} {
  func.func @kernel(%arg0: i32, %arg1: memref<50xf32, #tpu.memory_space<smem>>, %arg2: memref<5x256xf32, #tpu.memory_space<vmem>>, %arg3: memref<1x4x256xf32, #tpu.memory_space<vmem>>, %arg4: memref<1x4x256xf32, #tpu.memory_space<vmem>>, %arg5: memref<1x2x324xf32, #tpu.memory_space<vmem>>) attributes {dimension_semantics = [#tpu.dimension_semantics<parallel>], iteration_bounds = array<i64: 2>, scalar_prefetch = 0 : i64, scratch_operands = 1 : i64, tpu.core_type = #tpu.core_type<tc>, window_params = [{transform_indices = @transform_0, window_bounds = array<i64: 50>}, {pipeline_mode = #tpu.pipeline_mode<synchronous>, transform_indices = @transform_1, window_bounds = array<i64: 5, 256>}, {transform_indices = @transform_2, window_bounds = array<i64: 1, 4, 256>}, {transform_indices = @transform_3, window_bounds = array<i64: 1, 4, 256>}]} {
    %c0 = arith.constant 0 : index
    %c0_0 = arith.constant 0 : index
    %c0_1 = arith.constant 0 : index
    %0 = vector.load %arg3[%c0, %c0_0, %c0_1] : memref<1x4x256xf32, #tpu.memory_space<vmem>>, vector<1x4x256xf32>
    %cst = arith.constant dense<0xFF800000> : vector<1x256xf32>
    %1 = vector.multi_reduction <maximumf>, %0, %cst [1] : vector<1x4x256xf32> to vector<1x256xf32>
    %2 = vector.shape_cast %1 : vector<1x256xf32> to vector<1x1x256xf32>
    %cst_2 = arith.constant dense<0.000000e+00> : vector<1x256xf32>
    %3 = vector.multi_reduction <add>, %0, %cst_2 [1] : vector<1x4x256xf32> to vector<1x256xf32>
    %4 = vector.shape_cast %3 : vector<1x256xf32> to vector<1x1x256xf32>
    %cst_3 = arith.constant 2.500000e-01 : f32
    %5 = vector.broadcast %cst_3 : f32 to vector<1x1x256xf32>
    %6 = arith.mulf %4, %5 : vector<1x1x256xf32>
    %cst_4 = arith.constant 0.000000e+00 : f32
    %7 = vector.broadcast %cst_4 : f32 to vector<1x2x34xf32>
    %c0_5 = arith.constant 0 : index
    %c0_6 = arith.constant 0 : index
    %c0_7 = arith.constant 0 : index
    %8 = vector.load %arg5[%c0_5, %c0_6, %c0_7] : memref<1x2x324xf32, #tpu.memory_space<vmem>>, vector<1x2x34xf32>
    tpu.vector_store %arg5[%c0_5, %c0_6, %c0_7], %7 {strides = array<i32>} : memref<1x2x324xf32, #tpu.memory_space<vmem>>, vector<1x2x34xf32>,
    %c0_8 = arith.constant 0 : index
    %c0_9 = arith.constant 0 : index
    %c290 = arith.constant 290 : index
    %9 = vector.load %arg5[%c0_8, %c0_9, %c290] : memref<1x2x324xf32, #tpu.memory_space<vmem>>, vector<1x2x34xf32>
    tpu.vector_store %arg5[%c0_8, %c0_9, %c290], %7 {strides = array<i32>} : memref<1x2x324xf32, #tpu.memory_space<vmem>>, vector<1x2x34xf32>,
    %c0_10 = arith.constant 0 : index
    %c0_11 = arith.constant 0 : index
    %c34 = arith.constant 34 : index
    %10 = vector.load %arg5[%c0_10, %c0_11, %c34] : memref<1x2x324xf32, #tpu.memory_space<vmem>>, vector<1x1x256xf32>
    tpu.vector_store %arg5[%c0_10, %c0_11, %c34], %2 {strides = array<i32>} : memref<1x2x324xf32, #tpu.memory_space<vmem>>, vector<1x1x256xf32>,
    %c0_12 = arith.constant 0 : index
    %c1 = arith.constant 1 : index
    %c34_13 = arith.constant 34 : index
    %11 = vector.load %arg5[%c0_12, %c1, %c34_13] : memref<1x2x324xf32, #tpu.memory_space<vmem>>, vector<1x1x256xf32>
    tpu.vector_store %arg5[%c0_12, %c1, %c34_13], %6 {strides = array<i32>} : memref<1x2x324xf32, #tpu.memory_space<vmem>>, vector<1x1x256xf32>,
    %c0_14 = arith.constant 0 : index
    %c0_15 = arith.constant 0 : index
    %12 = vector.load %arg2[%c0_14, %c0_15] : memref<5x256xf32, #tpu.memory_space<vmem>>, vector<5x256xf32>
    %13 = vector.extract_strided_slice %12 {offsets = [0, 0], sizes = [1, 256], strides = [1, 1]} : vector<5x256xf32> to vector<1x256xf32>
    %14 = vector.extract_strided_slice %12 {offsets = [1, 0], sizes = [1, 256], strides = [1, 1]} : vector<5x256xf32> to vector<1x256xf32>
    %15 = vector.extract_strided_slice %12 {offsets = [3, 0], sizes = [1, 256], strides = [1, 1]} : vector<5x256xf32> to vector<1x256xf32>
    %16 = vector.extract_strided_slice %12 {offsets = [4, 0], sizes = [1, 256], strides = [1, 1]} : vector<5x256xf32> to vector<1x256xf32>
    %cst_16 = arith.constant 0.000000e+00 : f32
    %17 = vector.broadcast %cst_16 : f32 to vector<1x1x256xf32>
    %c0_17 = arith.constant 0 : index
    %c0_18 = arith.constant 0 : index
    %c0_19 = arith.constant 0 : index
    %18 = vector.load %arg5[%c0_17, %c0_18, %c0_19] : memref<1x2x324xf32, #tpu.memory_space<vmem>>, vector<1x1x256xf32>
    %c0_20 = arith.constant 0 : index
    %c1_21 = arith.constant 1 : index
    %c0_22 = arith.constant 0 : index
    %19 = vector.load %arg5[%c0_20, %c1_21, %c0_22] : memref<1x2x324xf32, #tpu.memory_space<vmem>>, vector<1x1x256xf32>
    %c0_23 = arith.constant 0 : index
    %20 = memref.load %arg1[%c0_23] : memref<50xf32, #tpu.memory_space<smem>>
    %21 = vector.broadcast %20 : f32 to vector<1x1x256xf32>
    %22 = arith.mulf %21, %18 : vector<1x1x256xf32>
    %c25 = arith.constant 25 : index
    %23 = memref.load %arg1[%c25] : memref<50xf32, #tpu.memory_space<smem>>
    %24 = vector.broadcast %23 : f32 to vector<1x1x256xf32>
    %25 = arith.mulf %24, %19 : vector<1x1x256xf32>
    %26 = arith.addf %22, %25 : vector<1x1x256xf32>
    %27 = vector.shape_cast %13 : vector<1x256xf32> to vector<1x1x256xf32>
    %28 = arith.mulf %26, %27 : vector<1x1x256xf32>
    %29 = arith.addf %17, %28 : vector<1x1x256xf32>
    %c0_24 = arith.constant 0 : index
    %c0_25 = arith.constant 0 : index
    %c1_26 = arith.constant 1 : index
    %30 = vector.load %arg5[%c0_24, %c0_25, %c1_26] : memref<1x2x324xf32, #tpu.memory_space<vmem>>, vector<1x1x256xf32>
    %c0_27 = arith.constant 0 : index
    %c1_28 = arith.constant 1 : index
    %c1_29 = arith.constant 1 : index
    %31 = vector.load %arg5[%c0_27, %c1_28, %c1_29] : memref<1x2x324xf32, #tpu.memory_space<vmem>>, vector<1x1x256xf32>
    %c1_30 = arith.constant 1 : index
    %32 = memref.load %arg1[%c1_30] : memref<50xf32, #tpu.memory_space<smem>>
    %33 = vector.broadcast %32 : f32 to vector<1x1x256xf32>
    %34 = arith.mulf %33, %30 : vector<1x1x256xf32>
    %c26 = arith.constant 26 : index
    %35 = memref.load %arg1[%c26] : memref<50xf32, #tpu.memory_space<smem>>
    %36 = vector.broadcast %35 : f32 to vector<1x1x256xf32>
    %37 = arith.mulf %36, %31 : vector<1x1x256xf32>
    %38 = arith.addf %34, %37 : vector<1x1x256xf32>
    %39 = vector.shape_cast %14 : vector<1x256xf32> to vector<1x1x256xf32>
    %40 = arith.mulf %38, %39 : vector<1x1x256xf32>
    %41 = arith.addf %29, %40 : vector<1x1x256xf32>
    %c0_31 = arith.constant 0 : index
    %c0_32 = arith.constant 0 : index
    %c2 = arith.constant 2 : index
    %42 = vector.load %arg5[%c0_31, %c0_32, %c2] : memref<1x2x324xf32, #tpu.memory_space<vmem>>, vector<1x1x256xf32>
    %c0_33 = arith.constant 0 : index
    %c1_34 = arith.constant 1 : index
    %c2_35 = arith.constant 2 : index
    %43 = vector.load %arg5[%c0_33, %c1_34, %c2_35] : memref<1x2x324xf32, #tpu.memory_space<vmem>>, vector<1x1x256xf32>
    %c2_36 = arith.constant 2 : index
    %44 = memref.load %arg1[%c2_36] : memref<50xf32, #tpu.memory_space<smem>>
    %45 = vector.broadcast %44 : f32 to vector<1x1x256xf32>
    %46 = arith.mulf %45, %42 : vector<1x1x256xf32>
    %c27 = arith.constant 27 : index
    %47 = memref.load %arg1[%c27] : memref<50xf32, #tpu.memory_space<smem>>
    %48 = vector.broadcast %47 : f32 to vector<1x1x256xf32>
    %49 = arith.mulf %48, %43 : vector<1x1x256xf32>
    %50 = arith.addf %46, %49 : vector<1x1x256xf32>
    %51 = arith.addf %41, %50 : vector<1x1x256xf32>
    %c0_37 = arith.constant 0 : index
    %c0_38 = arith.constant 0 : index
    %c3 = arith.constant 3 : index
    %52 = vector.load %arg5[%c0_37, %c0_38, %c3] : memref<1x2x324xf32, #tpu.memory_space<vmem>>, vector<1x1x256xf32>
    %c0_39 = arith.constant 0 : index
    %c1_40 = arith.constant 1 : index
    %c3_41 = arith.constant 3 : index
    %53 = vector.load %arg5[%c0_39, %c1_40, %c3_41] : memref<1x2x324xf32, #tpu.memory_space<vmem>>, vector<1x1x256xf32>
    %c3_42 = arith.constant 3 : index
    %54 = memref.load %arg1[%c3_42] : memref<50xf32, #tpu.memory_space<smem>>
    %55 = vector.broadcast %54 : f32 to vector<1x1x256xf32>
    %56 = arith.mulf %55, %52 : vector<1x1x256xf32>
    %c28 = arith.constant 28 : index
    %57 = memref.load %arg1[%c28] : memref<50xf32, #tpu.memory_space<smem>>
    %58 = vector.broadcast %57 : f32 to vector<1x1x256xf32>
    %59 = arith.mulf %58, %53 : vector<1x1x256xf32>
    %60 = arith.addf %56, %59 : vector<1x1x256xf32>
    %61 = vector.shape_cast %15 : vector<1x256xf32> to vector<1x1x256xf32>
    %62 = arith.mulf %60, %61 : vector<1x1x256xf32>
    %63 = arith.addf %51, %62 : vector<1x1x256xf32>
    %c0_43 = arith.constant 0 : index
    %c0_44 = arith.constant 0 : index
    %c4 = arith.constant 4 : index
    %64 = vector.load %arg5[%c0_43, %c0_44, %c4] : memref<1x2x324xf32, #tpu.memory_space<vmem>>, vector<1x1x256xf32>
    %c0_45 = arith.constant 0 : index
    %c1_46 = arith.constant 1 : index
    %c4_47 = arith.constant 4 : index
    %65 = vector.load %arg5[%c0_45, %c1_46, %c4_47] : memref<1x2x324xf32, #tpu.memory_space<vmem>>, vector<1x1x256xf32>
    %c4_48 = arith.constant 4 : index
    %66 = memref.load %arg1[%c4_48] : memref<50xf32, #tpu.memory_space<smem>>
    %67 = vector.broadcast %66 : f32 to vector<1x1x256xf32>
    %68 = arith.mulf %67, %64 : vector<1x1x256xf32>
    %c29 = arith.constant 29 : index
    %69 = memref.load %arg1[%c29] : memref<50xf32, #tpu.memory_space<smem>>
    %70 = vector.broadcast %69 : f32 to vector<1x1x256xf32>
    %71 = arith.mulf %70, %65 : vector<1x1x256xf32>
    %72 = arith.addf %68, %71 : vector<1x1x256xf32>
    %73 = vector.shape_cast %16 : vector<1x256xf32> to vector<1x1x256xf32>
    %74 = arith.mulf %72, %73 : vector<1x1x256xf32>
    %75 = arith.addf %63, %74 : vector<1x1x256xf32>
    %c0_49 = arith.constant 0 : index
    %c0_50 = arith.constant 0 : index
    %c16 = arith.constant 16 : index
    %76 = vector.load %arg5[%c0_49, %c0_50, %c16] : memref<1x2x324xf32, #tpu.memory_space<vmem>>, vector<1x1x256xf32>
    %c0_51 = arith.constant 0 : index
    %c1_52 = arith.constant 1 : index
    %c16_53 = arith.constant 16 : index
    %77 = vector.load %arg5[%c0_51, %c1_52, %c16_53] : memref<1x2x324xf32, #tpu.memory_space<vmem>>, vector<1x1x256xf32>
    %c5 = arith.constant 5 : index
    %78 = memref.load %arg1[%c5] : memref<50xf32, #tpu.memory_space<smem>>
    %79 = vector.broadcast %78 : f32 to vector<1x1x256xf32>
    %80 = arith.mulf %79, %76 : vector<1x1x256xf32>
    %c30 = arith.constant 30 : index
    %81 = memref.load %arg1[%c30] : memref<50xf32, #tpu.memory_space<smem>>
    %82 = vector.broadcast %81 : f32 to vector<1x1x256xf32>
    %83 = arith.mulf %82, %77 : vector<1x1x256xf32>
    %84 = arith.addf %80, %83 : vector<1x1x256xf32>
    %85 = vector.shape_cast %13 : vector<1x256xf32> to vector<1x1x256xf32>
    %86 = arith.mulf %84, %85 : vector<1x1x256xf32>
    %87 = arith.addf %75, %86 : vector<1x1x256xf32>
    %c0_54 = arith.constant 0 : index
    %c0_55 = arith.constant 0 : index
    %c17 = arith.constant 17 : index
    %88 = vector.load %arg5[%c0_54, %c0_55, %c17] : memref<1x2x324xf32, #tpu.memory_space<vmem>>, vector<1x1x256xf32>
    %c0_56 = arith.constant 0 : index
    %c1_57 = arith.constant 1 : index
    %c17_58 = arith.constant 17 : index
    %89 = vector.load %arg5[%c0_56, %c1_57, %c17_58] : memref<1x2x324xf32, #tpu.memory_space<vmem>>, vector<1x1x256xf32>
    %c6 = arith.constant 6 : index
    %90 = memref.load %arg1[%c6] : memref<50xf32, #tpu.memory_space<smem>>
    %91 = vector.broadcast %90 : f32 to vector<1x1x256xf32>
    %92 = arith.mulf %91, %88 : vector<1x1x256xf32>
    %c31 = arith.constant 31 : index
    %93 = memref.load %arg1[%c31] : memref<50xf32, #tpu.memory_space<smem>>
    %94 = vector.broadcast %93 : f32 to vector<1x1x256xf32>
    %95 = arith.mulf %94, %89 : vector<1x1x256xf32>
    %96 = arith.addf %92, %95 : vector<1x1x256xf32>
    %97 = vector.shape_cast %14 : vector<1x256xf32> to vector<1x1x256xf32>
    %98 = arith.mulf %96, %97 : vector<1x1x256xf32>
    %99 = arith.addf %87, %98 : vector<1x1x256xf32>
    %c0_59 = arith.constant 0 : index
    %c0_60 = arith.constant 0 : index
    %c18 = arith.constant 18 : index
    %100 = vector.load %arg5[%c0_59, %c0_60, %c18] : memref<1x2x324xf32, #tpu.memory_space<vmem>>, vector<1x1x256xf32>
    %c0_61 = arith.constant 0 : index
    %c1_62 = arith.constant 1 : index
    %c18_63 = arith.constant 18 : index
    %101 = vector.load %arg5[%c0_61, %c1_62, %c18_63] : memref<1x2x324xf32, #tpu.memory_space<vmem>>, vector<1x1x256xf32>
    %c7 = arith.constant 7 : index
    %102 = memref.load %arg1[%c7] : memref<50xf32, #tpu.memory_space<smem>>
    %103 = vector.broadcast %102 : f32 to vector<1x1x256xf32>
    %104 = arith.mulf %103, %100 : vector<1x1x256xf32>
    %c32 = arith.constant 32 : index
    %105 = memref.load %arg1[%c32] : memref<50xf32, #tpu.memory_space<smem>>
    %106 = vector.broadcast %105 : f32 to vector<1x1x256xf32>
    %107 = arith.mulf %106, %101 : vector<1x1x256xf32>
    %108 = arith.addf %104, %107 : vector<1x1x256xf32>
    %109 = arith.addf %99, %108 : vector<1x1x256xf32>
    %c0_64 = arith.constant 0 : index
    %c0_65 = arith.constant 0 : index
    %c19 = arith.constant 19 : index
    %110 = vector.load %arg5[%c0_64, %c0_65, %c19] : memref<1x2x324xf32, #tpu.memory_space<vmem>>, vector<1x1x256xf32>
    %c0_66 = arith.constant 0 : index
    %c1_67 = arith.constant 1 : index
    %c19_68 = arith.constant 19 : index
    %111 = vector.load %arg5[%c0_66, %c1_67, %c19_68] : memref<1x2x324xf32, #tpu.memory_space<vmem>>, vector<1x1x256xf32>
    %c8 = arith.constant 8 : index
    %112 = memref.load %arg1[%c8] : memref<50xf32, #tpu.memory_space<smem>>
    %113 = vector.broadcast %112 : f32 to vector<1x1x256xf32>
    %114 = arith.mulf %113, %110 : vector<1x1x256xf32>
    %c33 = arith.constant 33 : index
    %115 = memref.load %arg1[%c33] : memref<50xf32, #tpu.memory_space<smem>>
    %116 = vector.broadcast %115 : f32 to vector<1x1x256xf32>
    %117 = arith.mulf %116, %111 : vector<1x1x256xf32>
    %118 = arith.addf %114, %117 : vector<1x1x256xf32>
    %119 = vector.shape_cast %15 : vector<1x256xf32> to vector<1x1x256xf32>
    %120 = arith.mulf %118, %119 : vector<1x1x256xf32>
    %121 = arith.addf %109, %120 : vector<1x1x256xf32>
    %c0_69 = arith.constant 0 : index
    %c0_70 = arith.constant 0 : index
    %c20 = arith.constant 20 : index
    %122 = vector.load %arg5[%c0_69, %c0_70, %c20] : memref<1x2x324xf32, #tpu.memory_space<vmem>>, vector<1x1x256xf32>
    %c0_71 = arith.constant 0 : index
    %c1_72 = arith.constant 1 : index
    %c20_73 = arith.constant 20 : index
    %123 = vector.load %arg5[%c0_71, %c1_72, %c20_73] : memref<1x2x324xf32, #tpu.memory_space<vmem>>, vector<1x1x256xf32>
    %c9 = arith.constant 9 : index
    %124 = memref.load %arg1[%c9] : memref<50xf32, #tpu.memory_space<smem>>
    %125 = vector.broadcast %124 : f32 to vector<1x1x256xf32>
    %126 = arith.mulf %125, %122 : vector<1x1x256xf32>
    %c34_74 = arith.constant 34 : index
    %127 = memref.load %arg1[%c34_74] : memref<50xf32, #tpu.memory_space<smem>>
    %128 = vector.broadcast %127 : f32 to vector<1x1x256xf32>
    %129 = arith.mulf %128, %123 : vector<1x1x256xf32>
    %130 = arith.addf %126, %129 : vector<1x1x256xf32>
    %131 = vector.shape_cast %16 : vector<1x256xf32> to vector<1x1x256xf32>
    %132 = arith.mulf %130, %131 : vector<1x1x256xf32>
    %133 = arith.addf %121, %132 : vector<1x1x256xf32>
    %c0_75 = arith.constant 0 : index
    %c0_76 = arith.constant 0 : index
    %c32_77 = arith.constant 32 : index
    %134 = vector.load %arg5[%c0_75, %c0_76, %c32_77] : memref<1x2x324xf32, #tpu.memory_space<vmem>>, vector<1x1x256xf32>
    %c0_78 = arith.constant 0 : index
    %c1_79 = arith.constant 1 : index
    %c32_80 = arith.constant 32 : index
    %135 = vector.load %arg5[%c0_78, %c1_79, %c32_80] : memref<1x2x324xf32, #tpu.memory_space<vmem>>, vector<1x1x256xf32>
    %c10 = arith.constant 10 : index
    %136 = memref.load %arg1[%c10] : memref<50xf32, #tpu.memory_space<smem>>
    %137 = vector.broadcast %136 : f32 to vector<1x1x256xf32>
    %138 = arith.mulf %137, %134 : vector<1x1x256xf32>
    %c35 = arith.constant 35 : index
    %139 = memref.load %arg1[%c35] : memref<50xf32, #tpu.memory_space<smem>>
    %140 = vector.broadcast %139 : f32 to vector<1x1x256xf32>
    %141 = arith.mulf %140, %135 : vector<1x1x256xf32>
    %142 = arith.addf %138, %141 : vector<1x1x256xf32>
    %143 = vector.shape_cast %13 : vector<1x256xf32> to vector<1x1x256xf32>
    %144 = arith.mulf %142, %143 : vector<1x1x256xf32>
    %145 = arith.addf %133, %144 : vector<1x1x256xf32>
    %c0_81 = arith.constant 0 : index
    %c0_82 = arith.constant 0 : index
    %c33_83 = arith.constant 33 : index
    %146 = vector.load %arg5[%c0_81, %c0_82, %c33_83] : memref<1x2x324xf32, #tpu.memory_space<vmem>>, vector<1x1x256xf32>
    %c0_84 = arith.constant 0 : index
    %c1_85 = arith.constant 1 : index
    %c33_86 = arith.constant 33 : index
    %147 = vector.load %arg5[%c0_84, %c1_85, %c33_86] : memref<1x2x324xf32, #tpu.memory_space<vmem>>, vector<1x1x256xf32>
    %c11 = arith.constant 11 : index
    %148 = memref.load %arg1[%c11] : memref<50xf32, #tpu.memory_space<smem>>
    %149 = vector.broadcast %148 : f32 to vector<1x1x256xf32>
    %150 = arith.mulf %149, %146 : vector<1x1x256xf32>
    %c36 = arith.constant 36 : index
    %151 = memref.load %arg1[%c36] : memref<50xf32, #tpu.memory_space<smem>>
    %152 = vector.broadcast %151 : f32 to vector<1x1x256xf32>
    %153 = arith.mulf %152, %147 : vector<1x1x256xf32>
    %154 = arith.addf %150, %153 : vector<1x1x256xf32>
    %155 = vector.shape_cast %14 : vector<1x256xf32> to vector<1x1x256xf32>
    %156 = arith.mulf %154, %155 : vector<1x1x256xf32>
    %157 = arith.addf %145, %156 : vector<1x1x256xf32>
    %c0_87 = arith.constant 0 : index
    %c0_88 = arith.constant 0 : index
    %c34_89 = arith.constant 34 : index
    %158 = vector.load %arg5[%c0_87, %c0_88, %c34_89] : memref<1x2x324xf32, #tpu.memory_space<vmem>>, vector<1x1x256xf32>
    %c0_90 = arith.constant 0 : index
    %c1_91 = arith.constant 1 : index
    %c34_92 = arith.constant 34 : index
    %159 = vector.load %arg5[%c0_90, %c1_91, %c34_92] : memref<1x2x324xf32, #tpu.memory_space<vmem>>, vector<1x1x256xf32>
    %c12 = arith.constant 12 : index
    %160 = memref.load %arg1[%c12] : memref<50xf32, #tpu.memory_space<smem>>
    %161 = vector.broadcast %160 : f32 to vector<1x1x256xf32>
    %162 = arith.mulf %161, %158 : vector<1x1x256xf32>
    %c37 = arith.constant 37 : index
    %163 = memref.load %arg1[%c37] : memref<50xf32, #tpu.memory_space<smem>>
    %164 = vector.broadcast %163 : f32 to vector<1x1x256xf32>
    %165 = arith.mulf %164, %159 : vector<1x1x256xf32>
    %166 = arith.addf %162, %165 : vector<1x1x256xf32>
    %167 = arith.addf %157, %166 : vector<1x1x256xf32>
    %c0_93 = arith.constant 0 : index
    %c0_94 = arith.constant 0 : index
    %c35_95 = arith.constant 35 : index
    %168 = vector.load %arg5[%c0_93, %c0_94, %c35_95] : memref<1x2x324xf32, #tpu.memory_space<vmem>>, vector<1x1x256xf32>
    %c0_96 = arith.constant 0 : index
    %c1_97 = arith.constant 1 : index
    %c35_98 = arith.constant 35 : index
    %169 = vector.load %arg5[%c0_96, %c1_97, %c35_98] : memref<1x2x324xf32, #tpu.memory_space<vmem>>, vector<1x1x256xf32>
    %c13 = arith.constant 13 : index
    %170 = memref.load %arg1[%c13] : memref<50xf32, #tpu.memory_space<smem>>
    %171 = vector.broadcast %170 : f32 to vector<1x1x256xf32>
    %172 = arith.mulf %171, %168 : vector<1x1x256xf32>
    %c38 = arith.constant 38 : index
    %173 = memref.load %arg1[%c38] : memref<50xf32, #tpu.memory_space<smem>>
    %174 = vector.broadcast %173 : f32 to vector<1x1x256xf32>
    %175 = arith.mulf %174, %169 : vector<1x1x256xf32>
    %176 = arith.addf %172, %175 : vector<1x1x256xf32>
    %177 = vector.shape_cast %15 : vector<1x256xf32> to vector<1x1x256xf32>
    %178 = arith.mulf %176, %177 : vector<1x1x256xf32>
    %179 = arith.addf %167, %178 : vector<1x1x256xf32>
    %c0_99 = arith.constant 0 : index
    %c0_100 = arith.constant 0 : index
    %c36_101 = arith.constant 36 : index
    %180 = vector.load %arg5[%c0_99, %c0_100, %c36_101] : memref<1x2x324xf32, #tpu.memory_space<vmem>>, vector<1x1x256xf32>
    %c0_102 = arith.constant 0 : index
    %c1_103 = arith.constant 1 : index
    %c36_104 = arith.constant 36 : index
    %181 = vector.load %arg5[%c0_102, %c1_103, %c36_104] : memref<1x2x324xf32, #tpu.memory_space<vmem>>, vector<1x1x256xf32>
    %c14 = arith.constant 14 : index
    %182 = memref.load %arg1[%c14] : memref<50xf32, #tpu.memory_space<smem>>
    %183 = vector.broadcast %182 : f32 to vector<1x1x256xf32>
    %184 = arith.mulf %183, %180 : vector<1x1x256xf32>
    %c39 = arith.constant 39 : index
    %185 = memref.load %arg1[%c39] : memref<50xf32, #tpu.memory_space<smem>>
    %186 = vector.broadcast %185 : f32 to vector<1x1x256xf32>
    %187 = arith.mulf %186, %181 : vector<1x1x256xf32>
    %188 = arith.addf %184, %187 : vector<1x1x256xf32>
    %189 = vector.shape_cast %16 : vector<1x256xf32> to vector<1x1x256xf32>
    %190 = arith.mulf %188, %189 : vector<1x1x256xf32>
    %191 = arith.addf %179, %190 : vector<1x1x256xf32>
    %c0_105 = arith.constant 0 : index
    %c0_106 = arith.constant 0 : index
    %c48 = arith.constant 48 : index
    %192 = vector.load %arg5[%c0_105, %c0_106, %c48] : memref<1x2x324xf32, #tpu.memory_space<vmem>>, vector<1x1x256xf32>
    %c0_107 = arith.constant 0 : index
    %c1_108 = arith.constant 1 : index
    %c48_109 = arith.constant 48 : index
    %193 = vector.load %arg5[%c0_107, %c1_108, %c48_109] : memref<1x2x324xf32, #tpu.memory_space<vmem>>, vector<1x1x256xf32>
    %c15 = arith.constant 15 : index
    %194 = memref.load %arg1[%c15] : memref<50xf32, #tpu.memory_space<smem>>
    %195 = vector.broadcast %194 : f32 to vector<1x1x256xf32>
    %196 = arith.mulf %195, %192 : vector<1x1x256xf32>
    %c40 = arith.constant 40 : index
    %197 = memref.load %arg1[%c40] : memref<50xf32, #tpu.memory_space<smem>>
    %198 = vector.broadcast %197 : f32 to vector<1x1x256xf32>
    %199 = arith.mulf %198, %193 : vector<1x1x256xf32>
    %200 = arith.addf %196, %199 : vector<1x1x256xf32>
    %201 = vector.shape_cast %13 : vector<1x256xf32> to vector<1x1x256xf32>
    %202 = arith.mulf %200, %201 : vector<1x1x256xf32>
    %203 = arith.addf %191, %202 : vector<1x1x256xf32>
    %c0_110 = arith.constant 0 : index
    %c0_111 = arith.constant 0 : index
    %c49 = arith.constant 49 : index
    %204 = vector.load %arg5[%c0_110, %c0_111, %c49] : memref<1x2x324xf32, #tpu.memory_space<vmem>>, vector<1x1x256xf32>
    %c0_112 = arith.constant 0 : index
    %c1_113 = arith.constant 1 : index
    %c49_114 = arith.constant 49 : index
    %205 = vector.load %arg5[%c0_112, %c1_113, %c49_114] : memref<1x2x324xf32, #tpu.memory_space<vmem>>, vector<1x1x256xf32>
    %c16_115 = arith.constant 16 : index
    %206 = memref.load %arg1[%c16_115] : memref<50xf32, #tpu.memory_space<smem>>
    %207 = vector.broadcast %206 : f32 to vector<1x1x256xf32>
    %208 = arith.mulf %207, %204 : vector<1x1x256xf32>
    %c41 = arith.constant 41 : index
    %209 = memref.load %arg1[%c41] : memref<50xf32, #tpu.memory_space<smem>>
    %210 = vector.broadcast %209 : f32 to vector<1x1x256xf32>
    %211 = arith.mulf %210, %205 : vector<1x1x256xf32>
    %212 = arith.addf %208, %211 : vector<1x1x256xf32>
    %213 = vector.shape_cast %14 : vector<1x256xf32> to vector<1x1x256xf32>
    %214 = arith.mulf %212, %213 : vector<1x1x256xf32>
    %215 = arith.addf %203, %214 : vector<1x1x256xf32>
    %c0_116 = arith.constant 0 : index
    %c0_117 = arith.constant 0 : index
    %c50 = arith.constant 50 : index
    %216 = vector.load %arg5[%c0_116, %c0_117, %c50] : memref<1x2x324xf32, #tpu.memory_space<vmem>>, vector<1x1x256xf32>
    %c0_118 = arith.constant 0 : index
    %c1_119 = arith.constant 1 : index
    %c50_120 = arith.constant 50 : index
    %217 = vector.load %arg5[%c0_118, %c1_119, %c50_120] : memref<1x2x324xf32, #tpu.memory_space<vmem>>, vector<1x1x256xf32>
    %c17_121 = arith.constant 17 : index
    %218 = memref.load %arg1[%c17_121] : memref<50xf32, #tpu.memory_space<smem>>
    %219 = vector.broadcast %218 : f32 to vector<1x1x256xf32>
    %220 = arith.mulf %219, %216 : vector<1x1x256xf32>
    %c42 = arith.constant 42 : index
    %221 = memref.load %arg1[%c42] : memref<50xf32, #tpu.memory_space<smem>>
    %222 = vector.broadcast %221 : f32 to vector<1x1x256xf32>
    %223 = arith.mulf %222, %217 : vector<1x1x256xf32>
    %224 = arith.addf %220, %223 : vector<1x1x256xf32>
    %225 = arith.addf %215, %224 : vector<1x1x256xf32>
    %c0_122 = arith.constant 0 : index
    %c0_123 = arith.constant 0 : index
    %c51 = arith.constant 51 : index
    %226 = vector.load %arg5[%c0_122, %c0_123, %c51] : memref<1x2x324xf32, #tpu.memory_space<vmem>>, vector<1x1x256xf32>
    %c0_124 = arith.constant 0 : index
    %c1_125 = arith.constant 1 : index
    %c51_126 = arith.constant 51 : index
    %227 = vector.load %arg5[%c0_124, %c1_125, %c51_126] : memref<1x2x324xf32, #tpu.memory_space<vmem>>, vector<1x1x256xf32>
    %c18_127 = arith.constant 18 : index
    %228 = memref.load %arg1[%c18_127] : memref<50xf32, #tpu.memory_space<smem>>
    %229 = vector.broadcast %228 : f32 to vector<1x1x256xf32>
    %230 = arith.mulf %229, %226 : vector<1x1x256xf32>
    %c43 = arith.constant 43 : index
    %231 = memref.load %arg1[%c43] : memref<50xf32, #tpu.memory_space<smem>>
    %232 = vector.broadcast %231 : f32 to vector<1x1x256xf32>
    %233 = arith.mulf %232, %227 : vector<1x1x256xf32>
    %234 = arith.addf %230, %233 : vector<1x1x256xf32>
    %235 = vector.shape_cast %15 : vector<1x256xf32> to vector<1x1x256xf32>
    %236 = arith.mulf %234, %235 : vector<1x1x256xf32>
    %237 = arith.addf %225, %236 : vector<1x1x256xf32>
    %c0_128 = arith.constant 0 : index
    %c0_129 = arith.constant 0 : index
    %c52 = arith.constant 52 : index
    %238 = vector.load %arg5[%c0_128, %c0_129, %c52] : memref<1x2x324xf32, #tpu.memory_space<vmem>>, vector<1x1x256xf32>
    %c0_130 = arith.constant 0 : index
    %c1_131 = arith.constant 1 : index
    %c52_132 = arith.constant 52 : index
    %239 = vector.load %arg5[%c0_130, %c1_131, %c52_132] : memref<1x2x324xf32, #tpu.memory_space<vmem>>, vector<1x1x256xf32>
    %c19_133 = arith.constant 19 : index
    %240 = memref.load %arg1[%c19_133] : memref<50xf32, #tpu.memory_space<smem>>
    %241 = vector.broadcast %240 : f32 to vector<1x1x256xf32>
    %242 = arith.mulf %241, %238 : vector<1x1x256xf32>
    %c44 = arith.constant 44 : index
    %243 = memref.load %arg1[%c44] : memref<50xf32, #tpu.memory_space<smem>>
    %244 = vector.broadcast %243 : f32 to vector<1x1x256xf32>
    %245 = arith.mulf %244, %239 : vector<1x1x256xf32>
    %246 = arith.addf %242, %245 : vector<1x1x256xf32>
    %247 = vector.shape_cast %16 : vector<1x256xf32> to vector<1x1x256xf32>
    %248 = arith.mulf %246, %247 : vector<1x1x256xf32>
    %249 = arith.addf %237, %248 : vector<1x1x256xf32>
    %c0_134 = arith.constant 0 : index
    %c0_135 = arith.constant 0 : index
    %c64 = arith.constant 64 : index
    %250 = vector.load %arg5[%c0_134, %c0_135, %c64] : memref<1x2x324xf32, #tpu.memory_space<vmem>>, vector<1x1x256xf32>
    %c0_136 = arith.constant 0 : index
    %c1_137 = arith.constant 1 : index
    %c64_138 = arith.constant 64 : index
    %251 = vector.load %arg5[%c0_136, %c1_137, %c64_138] : memref<1x2x324xf32, #tpu.memory_space<vmem>>, vector<1x1x256xf32>
    %c20_139 = arith.constant 20 : index
    %252 = memref.load %arg1[%c20_139] : memref<50xf32, #tpu.memory_space<smem>>
    %253 = vector.broadcast %252 : f32 to vector<1x1x256xf32>
    %254 = arith.mulf %253, %250 : vector<1x1x256xf32>
    %c45 = arith.constant 45 : index
    %255 = memref.load %arg1[%c45] : memref<50xf32, #tpu.memory_space<smem>>
    %256 = vector.broadcast %255 : f32 to vector<1x1x256xf32>
    %257 = arith.mulf %256, %251 : vector<1x1x256xf32>
    %258 = arith.addf %254, %257 : vector<1x1x256xf32>
    %259 = vector.shape_cast %13 : vector<1x256xf32> to vector<1x1x256xf32>
    %260 = arith.mulf %258, %259 : vector<1x1x256xf32>
    %261 = arith.addf %249, %260 : vector<1x1x256xf32>
    %c0_140 = arith.constant 0 : index
    %c0_141 = arith.constant 0 : index
    %c65 = arith.constant 65 : index
    %262 = vector.load %arg5[%c0_140, %c0_141, %c65] : memref<1x2x324xf32, #tpu.memory_space<vmem>>, vector<1x1x256xf32>
    %c0_142 = arith.constant 0 : index
    %c1_143 = arith.constant 1 : index
    %c65_144 = arith.constant 65 : index
    %263 = vector.load %arg5[%c0_142, %c1_143, %c65_144] : memref<1x2x324xf32, #tpu.memory_space<vmem>>, vector<1x1x256xf32>
    %c21 = arith.constant 21 : index
    %264 = memref.load %arg1[%c21] : memref<50xf32, #tpu.memory_space<smem>>
    %265 = vector.broadcast %264 : f32 to vector<1x1x256xf32>
    %266 = arith.mulf %265, %262 : vector<1x1x256xf32>
    %c46 = arith.constant 46 : index
    %267 = memref.load %arg1[%c46] : memref<50xf32, #tpu.memory_space<smem>>
    %268 = vector.broadcast %267 : f32 to vector<1x1x256xf32>
    %269 = arith.mulf %268, %263 : vector<1x1x256xf32>
    %270 = arith.addf %266, %269 : vector<1x1x256xf32>
    %271 = vector.shape_cast %14 : vector<1x256xf32> to vector<1x1x256xf32>
    %272 = arith.mulf %270, %271 : vector<1x1x256xf32>
    %273 = arith.addf %261, %272 : vector<1x1x256xf32>
    %c0_145 = arith.constant 0 : index
    %c0_146 = arith.constant 0 : index
    %c66 = arith.constant 66 : index
    %274 = vector.load %arg5[%c0_145, %c0_146, %c66] : memref<1x2x324xf32, #tpu.memory_space<vmem>>, vector<1x1x256xf32>
    %c0_147 = arith.constant 0 : index
    %c1_148 = arith.constant 1 : index
    %c66_149 = arith.constant 66 : index
    %275 = vector.load %arg5[%c0_147, %c1_148, %c66_149] : memref<1x2x324xf32, #tpu.memory_space<vmem>>, vector<1x1x256xf32>
    %c22 = arith.constant 22 : index
    %276 = memref.load %arg1[%c22] : memref<50xf32, #tpu.memory_space<smem>>
    %277 = vector.broadcast %276 : f32 to vector<1x1x256xf32>
    %278 = arith.mulf %277, %274 : vector<1x1x256xf32>
    %c47 = arith.constant 47 : index
    %279 = memref.load %arg1[%c47] : memref<50xf32, #tpu.memory_space<smem>>
    %280 = vector.broadcast %279 : f32 to vector<1x1x256xf32>
    %281 = arith.mulf %280, %275 : vector<1x1x256xf32>
    %282 = arith.addf %278, %281 : vector<1x1x256xf32>
    %283 = arith.addf %273, %282 : vector<1x1x256xf32>
    %c0_150 = arith.constant 0 : index
    %c0_151 = arith.constant 0 : index
    %c67 = arith.constant 67 : index
    %284 = vector.load %arg5[%c0_150, %c0_151, %c67] : memref<1x2x324xf32, #tpu.memory_space<vmem>>, vector<1x1x256xf32>
    %c0_152 = arith.constant 0 : index
    %c1_153 = arith.constant 1 : index
    %c67_154 = arith.constant 67 : index
    %285 = vector.load %arg5[%c0_152, %c1_153, %c67_154] : memref<1x2x324xf32, #tpu.memory_space<vmem>>, vector<1x1x256xf32>
    %c23 = arith.constant 23 : index
    %286 = memref.load %arg1[%c23] : memref<50xf32, #tpu.memory_space<smem>>
    %287 = vector.broadcast %286 : f32 to vector<1x1x256xf32>
    %288 = arith.mulf %287, %284 : vector<1x1x256xf32>
    %c48_155 = arith.constant 48 : index
    %289 = memref.load %arg1[%c48_155] : memref<50xf32, #tpu.memory_space<smem>>
    %290 = vector.broadcast %289 : f32 to vector<1x1x256xf32>
    %291 = arith.mulf %290, %285 : vector<1x1x256xf32>
    %292 = arith.addf %288, %291 : vector<1x1x256xf32>
    %293 = vector.shape_cast %15 : vector<1x256xf32> to vector<1x1x256xf32>
    %294 = arith.mulf %292, %293 : vector<1x1x256xf32>
    %295 = arith.addf %283, %294 : vector<1x1x256xf32>
    %c0_156 = arith.constant 0 : index
    %c0_157 = arith.constant 0 : index
    %c68 = arith.constant 68 : index
    %296 = vector.load %arg5[%c0_156, %c0_157, %c68] : memref<1x2x324xf32, #tpu.memory_space<vmem>>, vector<1x1x256xf32>
    %c0_158 = arith.constant 0 : index
    %c1_159 = arith.constant 1 : index
    %c68_160 = arith.constant 68 : index
    %297 = vector.load %arg5[%c0_158, %c1_159, %c68_160] : memref<1x2x324xf32, #tpu.memory_space<vmem>>, vector<1x1x256xf32>
    %c24 = arith.constant 24 : index
    %298 = memref.load %arg1[%c24] : memref<50xf32, #tpu.memory_space<smem>>
    %299 = vector.broadcast %298 : f32 to vector<1x1x256xf32>
    %300 = arith.mulf %299, %296 : vector<1x1x256xf32>
    %c49_161 = arith.constant 49 : index
    %301 = memref.load %arg1[%c49_161] : memref<50xf32, #tpu.memory_space<smem>>
    %302 = vector.broadcast %301 : f32 to vector<1x1x256xf32>
    %303 = arith.mulf %302, %297 : vector<1x1x256xf32>
    %304 = arith.addf %300, %303 : vector<1x1x256xf32>
    %305 = vector.shape_cast %16 : vector<1x256xf32> to vector<1x1x256xf32>
    %306 = arith.mulf %304, %305 : vector<1x1x256xf32>
    %307 = arith.addf %295, %306 : vector<1x1x256xf32>
    %308 = arith.negf %307 : vector<1x1x256xf32>
    %309 = math.exp %308 : vector<1x1x256xf32>
    %cst_162 = arith.constant 1.000000e+00 : f32
    %310 = vector.broadcast %cst_162 : f32 to vector<1x1x256xf32>
    %311 = arith.addf %310, %309 : vector<1x1x256xf32>
    %312 = arith.divf %310, %311 : vector<1x1x256xf32>
    %313 = vector.broadcast %312 : vector<1x1x256xf32> to vector<1x4x256xf32>
    %314 = arith.mulf %0, %313 : vector<1x4x256xf32>
    %c0_163 = arith.constant 0 : index
    %c0_164 = arith.constant 0 : index
    %c0_165 = arith.constant 0 : index
    %315 = vector.load %arg4[%c0_163, %c0_164, %c0_165] : memref<1x4x256xf32, #tpu.memory_space<vmem>>, vector<1x4x256xf32>
    tpu.vector_store %arg4[%c0_163, %c0_164, %c0_165], %314 {strides = array<i32>} : memref<1x4x256xf32, #tpu.memory_space<vmem>>, vector<1x4x256xf32>,
    return
  }
  func.func @transform_0(%arg0: i32) -> i32 {
    %c0_i32 = arith.constant 0 : i32
    %c0_i32_0 = arith.constant 0 : i32
    return %c0_i32 : i32
  }
  func.func @transform_1(%arg0: i32) -> (i32, i32) {
    %c0_i32 = arith.constant 0 : i32
    %c0_i32_0 = arith.constant 0 : i32
    %c0_i32_1 = arith.constant 0 : i32
    return %c0_i32, %c0_i32_0 : i32, i32
  }
  func.func @transform_2(%arg0: i32) -> (i32, i32, i32) {
    %c0_i32 = arith.constant 0 : i32
    %c0_i32_0 = arith.constant 0 : i32
    %c0_i32_1 = arith.constant 0 : i32
    return %arg0, %c0_i32, %c0_i32_0 : i32, i32, i32
  }
  func.func @transform_3(%arg0: i32) -> (i32, i32, i32) {
    %c0_i32 = arith.constant 0 : i32
    %c0_i32_0 = arith.constant 0 : i32
    %c0_i32_1 = arith.constant 0 : i32
    return %arg0, %c0_i32, %c0_i32_0 : i32, i32, i32
  }
}

</mosaic_0001>

<bundles_post_ra>
// kernel: tpu_custom_call.1
= control target key start
LH: loop header
LB: loop body
LE: loop exit
PB: predicated region body
PF: predicated region fallthrough
CT: control target
= control target key end

     0   :  { %s1848_s0 = inlined_call_operand.hbm [shape: f32[50], index: 0, kind: input, shape index: {}]   ;;  %s1849_s1 = inlined_call_operand.hbm [shape: f32[5,256], index: 1, kind: input, shape index: {}]   ;;  %s1850_s2 = inlined_call_operand.hbm [shape: f32[2,4,256], index: 2, kind: input, shape index: {}]   ;;  %s1851_s3 = inlined_call_operand.hbm [shape: f32[2,4,256], index: 3, kind: output, shape index: {}]  }
   0x1   :  { %1858 = sst [smem:[#allocation15_spill]] %s1848_s0 }
   0x2   :  { %1859 = sst [smem:[#allocation16_spill]] %s1849_s1 }
   0x3   :  { %1860 = sst [smem:[#allocation17_spill]] %s1850_s2 }
   0x4   :  { %8 = vsyncpa [#allocation6], 0 }
   0x5   :  { %9 = vsyncpa [#allocation4], 0 }
   0x6   :  { %10 = vsyncpa [#allocation9], 0 }
   0x7   :  { %12 = vsyncpa [#allocation9 + $0x1], 0 }
   0x8   :  { %13 = vsyncpa [#allocation5], 0 }
   0x9   :  { %15 = vsyncpa [#allocation5 + $0x1], 0  ;;  %s1415_s12 = smov 0   ;;  %s1417_s13 = smov 0  }
   0xa   :  { %s1419_s14 = smov 0   ;;  %s1421_s15 = smov 0  }
   0xb LB: > { %s1436_s16 = sadd.s32 4294967295, %s1344_s15   ;;  %s1016_s17 = sadd.s32 4294967294, %s1344_s15   ;;  %s1344_s15 = sphi %s1421_s15, %s1889_s15   ;;  %s1340_s14 = sphi %s1419_s14, %s1888_s14   ;;  %s1336_s13 = sphi %s1417_s13, %s1887_s13   ;;  %s1332_s12 = sphi %s1415_s12, %s1886_s12  }
   0xc   : > { %p83_p0 = scmp.ne.s32.totalorder %s1336_s13, %s1332_s12  ;;  %p1852_p1 = scmp.eq.s32.totalorder %s1436_s16, 0 }
   0xd   : > { %p107_p2 = scmp.eq.s32.totalorder %s1436_s16, 1  ;;  %p113_p3 = scmp.eq.s32.totalorder %s1016_s17, 1 }
   0xe   : > { %p1445_p4 = por %p1852_p1, %p83_p0  ;;  %p1017_p5 = scmp.ge.s32.totalorder %s1344_s15, 1 }
   0xf   : > { %p1450_p6 = por %p113_p3, %p83_p0  ;;  %p120_p7 = scmp.lt.s32.totalorder %s1344_s15, 3 }
  0x10   : > { %s1861_s18 = scalar_select %p1445_p4, 1, 0 }
  0x11   : > { %s1862_s19 = scalar_select %p1450_p6, 1, 0 }
  0x12   : > { %p1455_p8 = pnand %p1017_p5, %p120_p7  ;;  %s1346_s21 = smov [#allocation7]  }
  0x13   : > { %s142_s22 = sshll.u32 %s1346_s21, 4  ;;  %s1469_s24 = sadd.s32 1, %s1344_s15   ;;  %s143_s22 = int_to_ptr.vmem [resolvable:$true] %s142_s22 }
  0x14   : > { %s1863_s20 = scalar_select %p1455_p8, 1, 0 }
  0x15   : > { %p1098_p10 = pneg %p1455_p8  ;;  %s67_s25 = ssub.s32 %s1344_s15, %s1469_s24 }
  0x16   : > { %s70_s26 = sadd.s32 1, %s1340_s14  ;;  %p1474_p12 = scmp.eq.s32.totalorder %s67_s25, 0 }
  0x17   : > { %p1464_p11 = pnand %p1098_p10, %p1852_p1  ;;  %s1347_s28 = smov [#allocation3]  }
  0x18   : > { %s1866_s0 = sld [smem:[#allocation15_spill]]  ;;  %s1229_s4 = scalar_lea.vmem %s143_s22, 256 }
  0x19   : > { %p1220_p13 = pneg %p1464_p11  ;;  %p1230_p0 = scmp.ne.s32.totalorder %s143_s22, %s1229_s4 }
  0x1a   : > { %p1237_p7 = scmp.lt.s32.totalorder %s143_s22, %s143_s22  ;;  %p1238_p10 = scmp.lt.s32.totalorder %s1229_s4, %s1229_s4 }
  0x1b   : > { %p1232_p3 = pnand %p1230_p0, %p1220_p13 }
  0x1c   : > { %p1239_p9 = por %p1238_p10, %p1237_p7 }
  0x1d   : > { %p1233_p5 = pneg %p1232_p3 }
  0x1e   : > { %1101 = dma.hbm_to_smem (!%p1464_p11), %s1866_s0, 16, %s1347_s28, [#allocation6]  }
  0x1f   : > { %p1240_p1 = pnand %p1239_p9, %p1233_p5 }
  0x21   : > { %1243 = shalt.err (!%p1240_p1)
}
  0x22   : > { %s1867_s1 = sld [smem:[#allocation16_spill]]  ;;  %p77_p9 = scmp.ne.s32.totalorder %s1340_s14, %s1336_s13 }
  0x23   : > { %s1493_s7 = scalar_select %p1474_p12, %s1340_s14, %s70_s26  }
  0x24   : > { %p78_p1 = scmp.eq.s32.totalorder %s1344_s15, 0  ;;  %p1115_p13 = scmp.lt.s32.totalorder %s1344_s15, 2 }
  0x25   : > { %s153_s8 = sand.u32 1, %s1340_s14   ;;  %p1502_p3 = por %p107_p2, %p77_p9 }
  0x26   : > { %p79_p0 = por %p78_p1, %p77_p9  ;;  %s1021_s10 = sshll.u32 %s153_s8, 3 }
  0x27   : > { %s1868_s9 = scalar_select %p1502_p3, 1, 0 }
  0x28   : > { %1104 = dma.hbm_to_vmem [thread:$0]  (!%p1464_p11), %s1867_s1, 256, %s143_s22, [#allocation4]  }
  0x29   : > { %s1084_s11 = sshll.u32 %s1344_s15, 7  ;;  %s1869_s2 = sld [smem:[#allocation17_spill]] }
  0x2a   : > { %s157_s22 = scalar_lea.vmem [#allocation8], %s1021_s10  ;;  %p1512_p11 = pnand %p1115_p13, %p79_p0 }
  0x2b   : > { %s165_s25 = sshll.u32 %s157_s22, 4  ;;  %s154_s27 = scalar_lea.sflag [#allocation9], %s153_s8  ;;  %s166_s25 = int_to_ptr.vmem [resolvable:$true] %s165_s25 }
  0x2c   : > { %p1246_p12 = pneg %p1512_p11 }
  0x2f   : > { %s1510_s23 = scalar_lea.hbm %s1869_s2, %s1084_s11  ;;  %s1249_s4 = scalar_lea.hbm %s1869_s2, 256 }
  0x30   : > { %s1244_s28 = scalar_lea.hbm %s1510_s23, 128  ;;  %p1250_p10 = scmp.lt.s32.totalorder %s1510_s23, %s1869_s2 }
  0x31   : > { %p1245_p2 = scmp.ne.s32.totalorder %s1510_s23, %s1244_s28  ;;  %p1251_p9 = scmp.lt.s32.totalorder %s1249_s4, %s1244_s28 }
  0x33   : > { %p1247_p5 = pnand %p1246_p12, %p1245_p2  ;;  %p1252_p1 = por %p1251_p9, %p1250_p10 }
  0x35   : > { %p1248_p7 = pneg %p1247_p5 }
  0x37   : > { %p1253_p13 = pnand %p1252_p1, %p1248_p7 }
  0x39   : > { %1256 = shalt.err (!%p1253_p13)
}
  0x3a   : > { %s1257_s10 = scalar_lea.vmem %s166_s25, 128  ;;  %s1348_s8 = smov [#allocation8]  }
  0x3b   : > { %p1258_p0 = scmp.ne.s32.totalorder %s166_s25, %s1257_s10  ;;  %s1262_s11 = sshll.u32 %s1348_s8, 4  ;;  %s1263_s11 = int_to_ptr.vmem [resolvable:$false] %s1262_s11 }
  0x3c   : > { %s1264_s17 = scalar_lea.vmem %s1263_s11, 256  ;;  %p1265_p2 = scmp.lt.s32.totalorder %s166_s25, %s1263_s11 }
  0x3d   : > { %p1260_p6 = pnand %p1258_p0, %p1246_p12  ;;  %p1266_p5 = scmp.lt.s32.totalorder %s1264_s17, %s1257_s10 }
  0x3f   : > { %p1261_p3 = pneg %p1260_p6  ;;  %p1267_p4 = por %p1266_p5, %p1265_p2 }
  0x41   : > { %p1268_p8 = pnand %p1267_p4, %p1261_p3 }
  0x43   : > { %1271 = shalt.err (!%p1268_p8)
}
  0x44   : > { %1108 = dma.hbm_to_vmem [thread:$0]  (!%p1512_p11), %s1510_s23, 128, %s166_s25, %s154_s27  }
  0x45   : > { %p1871_p7 = scmp.ne.s32.totalorder %s1863_s20, 0 }
  0x46   : > { %p1872_p10 = scmp.eq.s32.totalorder (!%p1871_p7), %s1436_s16, 0 }
  0x47   : > { %174 = sbr.rel (%p1871_p7) target bundleno = 465 (0x1d1), region = 32 }
  0x4c   : > { %1315 = dma.done.wait (%p1872_p10), [#allocation6], 16   ;;  %p1873_p6 = pmov %p1872_p10 }
  0x4e   : > { %1317 = vsyncadd (%p1873_p6), [#allocation6], 4294967280  ;;  %p1874_p12 = pmov %p1873_p6 }
  0x4f   : > { %p1875_p9 = pmov %p1873_p6 }
  0x50   : > { %1319 = dma.done.wait (%p1874_p12), [#allocation4], 256  }
  0x51   : > { %1321 = vsyncadd (%p1875_p9), [#allocation4], 4294967040  ;;  %s1541_s21 = sand.u32 1, %s1336_s13   ;;  %p1876_p4 = scmp.ne.s32.totalorder %s1861_s18, 0 }
  0x52   : > { %s1856_s20 = sshll.u32 %s1541_s21, 3  ;;  %s185_s23 = scalar_lea.sflag [#allocation9], %s1541_s21 }
  0x53   : > { %s1547_s22 = scalar_lea.vmem [#allocation8], %s1856_s20 }
  0x54   : > { %1323 = dma.done.wait (%p1876_p4), %s185_s23, 128  }
  0x55   : > { %1325 = vsyncadd (%p1876_p4), %s185_s23, 4294967168 }
  0x56   : > { %193 = sfence }
  0x57   : > { %v257_v0 = vlaneseq  ;;  %v1349_v1 = vmov 1966171168   ;;  %v212_v3 = vld [vmem:[%s1547_s22] sm:$0xff]  ;;  %vm216_vm0 = vcmask 1043456   ;;  %v1198_v9 = vld [vmem:[#allocation7] ss:$8 sps:$4 sm:$0xff]  }
  0x58   : > { %v255_v2 = vunpack.c.l.s4 %v1349_v1  ;;  %v214_v5 = vcombine.high %v212_v3, %v212_v3  ;;  %v217_v6 = vsel %vm216_vm0, %v212_v3, -inf  ;;  %v231_v7 = vsel %vm216_vm0, %v212_v3, 0.0  ;;  %s1351_s18 = smov 1   ;;  %s1352_s25 = smov 3  }
  0x59   : > { %v1555_v4 = vshrl.u32 %v257_v0, 7  ;;  %v218_v10 = vrot.slane %v217_v6, 4  ;;  %v232_v11 = vrot.slane %v231_v7, 4  ;;  %vm247_vm1 = vcmask 271360   ;;  %s1353_s26 = smov 16   ;;  %s1354_s27 = smov 34  }
  0x5a   : > { %v256_v8 = vunpack.c.0.s8 %v255_v2  ;;  %v224_v12 = vsel %vm216_vm0, %v214_v5, -inf  ;;  %v238_v13 = vsel %vm216_vm0, %v214_v5, 0.0  ;;  %v1350_v34 = vmov 0.0   ;;  %v1201_v47 = vld [vmem:[#allocation7 + $0x4] ss:$8 sps:$4 sm:$0x11]  }
  0x5b   : > { %v219_v15 = vmax.f32 %v217_v6, %v218_v10  ;;  %v225_v16 = vrot.slane %v224_v12, 4  ;;  %v233_v17 = vadd.f32 %v232_v11, %v231_v7  ;;  %v239_v18 = vrot.slane %v238_v13, 4  ;;  %248 = vst.msk [vmem:[#allocation2] sm:$0x3] %vm247_vm1, %v1350_v34  ;;  %s1355_s28 = smov 19   ;;  %s1356_s29 = smov 32  }
  0x5c   : > { %v259_v14 = vsub.s32 %v256_v8, %v1555_v4  ;;  %vm249_vm2 = vcmask 550160   ;;  %s1357_s30 = smov 4   ;;  %s1358_s4 = smov 35   ;;  %vm1575_vm3 = vcmp.ge.s32.totalorder %v257_v0, 34  ;;  %vm1580_vm4 = vcmp.lt.s32.totalorder %v257_v0, 290 }
  0x5d   : > { %v220_v20 = vrot.slane %v219_v15, 2  ;;  %v226_v21 = vmax.f32 %v224_v12, %v225_v16  ;;  %v234_v22 = vrot.slane %v233_v17, 2  ;;  %v240_v23 = vadd.f32 %v239_v18, %v238_v13  ;;  %250 = vst.msk [vmem:[#allocation2 + $0x4] sm:$0x3] %vm249_vm2, %v1350_v34  ;;  %s1359_s5 = smov 17   ;;  %s1360_s6 = smov 48   ;;  %vm277_vm6 = vmand %vm1575_vm3, %vm1580_vm4 }
  0x5e   : > { %v323_v19 = vrot.slane %v1198_v9, %v259_v14  ;;  %v422_v51 = vrot.slane %v1201_v47, %v259_v14  ;;  %s1361_s10 = smov 20   ;;  %s1362_s8 = smov 51   ;;  %vm271_vm5 = vcmask 277504   ;;  %vm354_vm7 = vcmask 7168  }
  0x5f   : > { %v221_v25 = vmax.f32 %v219_v15, %v220_v20  ;;  %v227_v26 = vrot.slane %v226_v21, 2  ;;  %v235_v27 = vadd.f32 %v234_v22, %v233_v17  ;;  %v241_v28 = vrot.slane %v240_v23, 2  ;;  %s1363_s11 = smov 33   ;;  %s1857_s17 = smov 64  }
  0x60   : > { %v343_v24 = vcombine.high %v323_v19, %v323_v19  ;;  %v1563_v43 = vrot.slane %v323_v19, %v259_v14  ;;  %v429_v53 = vrot.slane %v422_v51, %v259_v14  ;;  %s1365_s23 = smov 36   ;;  %s1620_s20 = sld [smem:[#allocation3 + $0x3]]  ;;  %vm394_vm8 = vcmask 23552  }
  0x61   : > { %v222_v30 = vrot.slane %v221_v25, 1  ;;  %v228_v31 = vmax.f32 %v226_v21, %v227_v26  ;;  %v236_v32 = vrot.slane %v235_v27, 1  ;;  %v242_v33 = vadd.f32 %v241_v28, %v240_v23  ;;  %s1626_s0 = sld [smem:[#allocation3 + $0x22]]  ;;  %p1883_p3 = scmp.ne.s32.totalorder %s1868_s9, 0 }
  0x62   : > { %v1558_v29 = vrot.slane %v343_v24, %v259_v14  ;;  %s1631_s1 = sld [smem:[#allocation3 + $0x5]]  ;;  %vm457_vm9 = vcmask 130048   ;;  %vm433_vm10 = vcmask 31744   ;;  %vm520_vm11 = vcmask 154624  }
  0x63   : > { %v223_v36 = vmax.f32 %v221_v25, %v222_v30  ;;  %v229_v37 = vrot.slane %v228_v31, 1  ;;  %v237_v38 = vadd.f32 %v236_v32, %v235_v27  ;;  %v243_v39 = vrot.slane %v242_v33, 1  ;;  %s1633_s2 = sld [smem:[#allocation3 + $0x1e]] }
  0x64   : > { %351 = vrot.lane.b32.xlu1 %v1558_v29, %s1351_s18  ;;  %v390_v35 = vcombine.high %v1558_v29, %v1558_v29  ;;  %s1366_s18 = smov 67   ;;  %vm481_vm12 = vcmask 138240   ;;  %vm568_vm13 = vcmask 261120   ;;  %vm544_vm14 = vcmask 162816  }
  0x65   : > { %v230_v40 = vmax.f32 %v228_v31, %v229_v37  ;;  %v244_v41 = vadd.f32 %v243_v39, %v242_v33  ;;  %v245_v42 = vmul.f32 0.25, %v237_v38  ;;  %vm631_vm15 = vcmask 285696  }
  0x66   : > { %vm592_vm0 = vcmask 269312   ;;  %vm679_vm1 = vcmask 392192   ;;  %vm655_vm2 = vcmask 293888   ;;  %vm703_vm3 = vcmask 400384  }
  0x67   : > { %v253_v44 = vcombine.low %v223_v36, %v230_v40  ;;  %v246_v45 = vmul.f32 0.25, %v244_v41  ;;  %vm742_vm4 = vcmask 416768  }
  0x68   : > { %391 = vrot.lane.b32.xlu1 %v390_v35, %s1352_s25  ;;  %s1367_s25 = smov 49  }
  0x69   : > { %v260_v46 = vrot.slane %v253_v44, %v259_v14  ;;  %v281_v48 = vcombine.low %v245_v42, %v246_v45 }
  0x6b   : > { %v267_v49 = vrot.slane %v260_v46, %v259_v14  ;;  %v288_v50 = vrot.slane %v281_v48, %v259_v14 }
  0x6c   : > { %454 = vrot.lane.b32.xlu1 %v1563_v43, %s1353_s26  ;;  %s1368_s26 = smov 52  }
  0x6d   : > { %268 = vrot.lane.b32.xlu0 %v267_v49, %s1354_s27  ;;  %v295_v52 = vrot.slane %v288_v50, %v259_v14 }
  0x70   : > { %517 = vrot.lane.b32.xlu1 %v390_v35, %s1355_s28  ;;  %s1370_s28 = smov 68  }
  0x71   : > { %296 = vrot.lane.b32.xlu0 %v295_v52, %s1354_s27  ;;  %s1369_s27 = smov 65  }
  0x74   : > { %565 = vrot.lane.b32.xlu1 %v1563_v43, %s1356_s29  ;;  %s1588_s29 = sld [smem:[#allocation3 + $0xa]] }
  0x75   : > { %430 = vrot.lane.b32.xlu0 %v429_v53, %s1357_s30  ;;  %s1590_s30 = sld [smem:[#allocation3 + $0x4]] }
  0x78   : > { %628 = vrot.lane.b32.xlu1 %v390_v35, %s1358_s4  ;;  %s1592_s4 = sld [smem:[#allocation3 + $0xd]] }
  0x79   : > { %478 = vrot.lane.b32.xlu0 %v1558_v29, %s1359_s5  ;;  %s1596_s5 = sld [smem:[#allocation3 + $0x23]] }
  0x7b   : > { %v409_v7 = vstv %s1590_s30  ;;  %s1646_s30 = sld [smem:[#allocation3 + $0x21]] }
  0x7c   : > { %676 = vrot.lane.b32.xlu1 %v1563_v43, %s1360_s6  ;;  %s1598_s6 = sld [smem:[#allocation3 + $0x1d]] }
  0x7d   : > { %541 = vrot.lane.b32.xlu0 %v429_v53, %s1361_s10  ;;  %s1600_s10 = sld [smem:[#allocation3 + $0x26]] }
  0x7f   : > { %v562_v39 = vstv %s1596_s5  ;;  %s1673_s5 = sld [smem:[#allocation3 + $0x25]] }
  0x80   : > { %739 = vrot.lane.b32.xlu1 %v390_v35, %s1362_s8  ;;  %s1602_s8 = sld [smem:[#allocation3 + $0x6]] }
  0x81   : > { %589 = vrot.lane.b32.xlu0 %v1558_v29, %s1363_s11  ;;  %s1604_s11 = sld [smem:[#allocation3 + $0x1f]] }
  0x82   : > { %v412_v3 = vstv %s1598_s6  ;;  %s1639_s6 = sld [smem:[#allocation3 + $0x8]] }
  0x84   : > { %787 = vrot.lane.b32.xlu1 %v1563_v43, %s1857_s17  ;;  %s1624_s17 = sld [smem:[#allocation3 + $0x1c]] }
  0x85   : > { %652 = vrot.lane.b32.xlu0 %v429_v53, %s1365_s23  ;;  %s1606_s23 = sld [smem:[#allocation3 + $0x28]] }
  0x86   : > { %v472_v17 = vstv %s1602_s8  ;;  %s1653_s8 = sld [smem:[#allocation3 + $0x20]] }
  0x87   : > { %v475_v15 = vstv %s1604_s11  ;;  %s1655_s11 = sld [smem:[#allocation3 + $0xb]] }
  0x88   : > { %849 = vrot.lane.b32.xlu1 %v390_v35, %s1366_s18  ;;  %s1610_s18 = sld [smem:[#allocation3 + $0x9]] }
  0x89   : > { %700 = vrot.lane.b32.xlu0 %v1558_v29, %s1367_s25  ;;  %s1612_s25 = sld [smem:[#allocation3 + $0x2]] }
  0x8a   : > { %v387_v30 = vstv %s1624_s17  ;;  %s1663_s17 = sld [smem:[#allocation3 + $0x27]] }
  0x8d   : > { %763 = vrot.lane.b32.xlu0 %v429_v53, %s1368_s26  ;;  %s1614_s26 = sld [smem:[#allocation3 + $0x1b]] }
  0x8f   : > { %v369_v10 = vstv %s1612_s25  ;;  %s1660_s25 = sld [smem:[#allocation3 + $0x24]] }
  0x91   : > { %810 = vrot.lane.b32.xlu0 %v1558_v29, %s1369_s27  ;;  %s1616_s27 = sld [smem:[#allocation3 + $0x1]]  ;;  %v384_v29 = vstv %s1620_s20  ;;  %s1371_s20 = smov 126  }
  0x93   : > { %v372_v11 = vstv %s1614_s26  ;;  %s1671_s26 = sld [smem:[#allocation3 + $0x7]] }
  0x95   : > { %873 = vrot.lane.b32.xlu0 %v429_v53, %s1370_s28  ;;  %s1618_s28 = sld [smem:[#allocation3 + $0x1a]] }
  0x97   : > { %v337_v20 = vstv %s1616_s27  ;;  %s1372_s27 = smov 127  }
  0x9b   : > { %v340_v21 = vstv %s1618_s28  ;;  %s1373_s28 = smov 124  }
  0xd6   : > { %v1594_v59 = vpop.permute.xlu1 %351 }
  0xd7   : > { %v353_v26 = vrot.slane %v1594_v59, 7 }
  0xd9   : > { %v355_v41 = vsel %vm354_vm7, %v353_v26, %v1594_v59  ;;  %vm813_vm7 = vcmask 531456  }
  0xda   : > { %v1608_v63 = vpop.permute.xlu1 %391 }
  0xdb   : > { %v393_v35 = vrot.slane %v1608_v63, 7 }
  0xdd   : > { %v395_v52 = vsel %vm394_vm8, %v393_v35, %v1608_v63  ;;  %v514_v63 = vstv %s1646_s30  ;;  %s1705_s30 = sld [smem:[#allocation3 + $0x10]]  ;;  %vm876_vm8 = vcmask 556032  }
  0xde   : > { %v1622_v1 = vpop.permute.xlu1 %454 }
  0xdf   : > { %v269_v56 = vpop.permute.xlu0 %268  ;;  %v456_v42 = vrot.slane %v1622_v1, 7 }
  0xe0   : > { %v270_v57 = vrot.slane %v269_v56, 7 }
  0xe2   : > { %v272_v58 = vsel %vm271_vm5, %v270_v57, %v269_v56  ;;  %v1641_v16 = vpop.permute.xlu1 %517  ;;  %v448_v57 = vstv %s1631_s1  ;;  %s1688_s1 = sld [smem:[#allocation3 + $0xc]] }
  0xe3   : > { %278 = vst.msk [vmem:[#allocation2] ss:$2 sm:$0x7] %vm277_vm6, %v272_v58  ;;  %v297_v60 = vpop.permute.xlu0 %296  ;;  %v519_v44 = vrot.slane %v1641_v16, 7  ;;  %v451_v58 = vstv %s1633_s2  ;;  %s1694_s2 = sld [smem:[#allocation3 + $0xf]] }
  0xe4   : > { %v298_v61 = vrot.slane %v297_v60, 7 }
  0xe6   : > { %v299_v62 = vsel %vm271_vm5, %v298_v61, %v297_v60  ;;  %v1669_v45 = vpop.permute.xlu1 %565  ;;  %vm790_vm5 = vcmask 523264  }
  0xe7   : > { %302 = vst.msk [vmem:[#allocation2 + $0x1] ss:$2 sm:$0x7] %vm277_vm6, %v299_v62  ;;  %v431_v0 = vpop.permute.xlu0 %430  ;;  %v511_v62 = vstv %s1639_s6  ;;  %s1375_s6 = smov 111   ;;  %vm766_vm6 = vcmask 424960  }
  0xe8   : > { %v432_v13 = vrot.slane %v431_v0, 7 }
  0xea   : > { %v406_v6 = vld [vmem:[#allocation2] ss:$2 sm:$0x7]  ;;  %v434_v36 = vsel %vm433_vm10, %v432_v13, %v431_v0  ;;  %v559_v0 = vstv %s1588_s29  ;;  %s1374_s29 = smov 125   ;;  %vm362_vm10 = vcmask 1039360  }
  0xeb   : > { %v1629_v5 = vpop.permute.xlu0 %478  ;;  %v366_v8 = vld [vmem:[#allocation2] ss:$2 sm:$0x7]  ;;  %v410_v22 = vmul.f32 %v409_v7, %v406_v6 }
  0xec   : > { %v334_v18 = vld [vmem:[#allocation2] ss:$2 sm:$0x7]  ;;  %v370_v24 = vmul.f32 %v369_v10, %v366_v8  ;;  %v480_v38 = vrot.slane %v1629_v5, 7  ;;  %v385_v50 = vmul.f32 %v384_v29, %v366_v8  ;;  %v458_v10 = vsel %vm457_vm9, %v456_v42, %v1622_v1 }
  0xed   : > { %v469_v23 = vld [vmem:[#allocation2] ss:$2 sm:$0x7]  ;;  %v338_v33 = vmul.f32 %v337_v20, %v334_v18  ;;  %v567_v18 = vrot.slane %v1669_v45, 7  ;;  %v586_v42 = vstv %s1660_s25  ;;  %s1378_s25 = smov 110   ;;  %vm852_vm9 = vcmask 547840  }
  0xee   : > { %v407_v2 = vld [vmem:[#allocation2 + $0x1] ss:$2 sm:$0x7]  ;;  %v473_v37 = vmul.f32 %v472_v17, %v469_v23  ;;  %v482_v53 = vsel %vm481_vm12, %v480_v38, %v1629_v5  ;;  %v445_v55 = vld [vmem:[#allocation2] ss:$2 sm:$0x7]  ;;  %v521_v17 = vsel %vm520_vm11, %v519_v44, %v1641_v16  ;;  %v496_v16 = vstv %s1671_s26 }
  0xef   : > { %v367_v9 = vld [vmem:[#allocation2 + $0x1] ss:$2 sm:$0x7]  ;;  %v413_v12 = vmul.f32 %v412_v3, %v407_v2  ;;  %v1649_v28 = vpop.permute.xlu0 %541  ;;  %v493_v60 = vld [vmem:[#allocation2] ss:$2 sm:$0x7]  ;;  %v538_v2 = vstv %s1626_s0  ;;  %v499_v3 = vstv %s1653_s8  ;;  %v449_v8 = vmul.f32 %v448_v57, %v445_v55 }
  0xf0   : > { %v470_v14 = vld [vmem:[#allocation2 + $0x1] ss:$2 sm:$0x7]  ;;  %v373_v25 = vmul.f32 %v372_v11, %v367_v9  ;;  %v388_v51 = vmul.f32 %v387_v30, %v367_v9  ;;  %v556_v5 = vld [vmem:[#allocation2] ss:$2 sm:$0x7]  ;;  %v673_v38 = vstv %s1606_s23 }
  0xf1   : > { %v335_v19 = vld [vmem:[#allocation2 + $0x1] ss:$2 sm:$0x7]  ;;  %v476_v27 = vmul.f32 %v475_v15, %v470_v14  ;;  %v414_v31 = vadd.f32 %v413_v12, %v410_v22  ;;  %v1692_v12 = vpop.permute.xlu1 %628  ;;  %v512_v14 = vmul.f32 %v511_v62, %v493_v60  ;;  %s1700_s0 = sld [smem:[#allocation3 + $0xe]]  ;;  %v560_v20 = vmul.f32 %v559_v0, %v556_v5  ;;  %s1377_s26 = smov 109  }
  0xf2   : > { %v374_v32 = vadd.f32 %v373_v25, %v370_v24  ;;  %v341_v34 = vmul.f32 %v340_v21, %v335_v19  ;;  %v557_v47 = vld [vmem:[#allocation2 + $0x1] ss:$2 sm:$0x7]  ;;  %v389_v59 = vadd.f32 %v388_v51, %v385_v50  ;;  %v622_v19 = vstv %s1592_s4  ;;  %v532_v21 = vld [vmem:[#allocation2] ss:$2 sm:$0x7] }
  0xf3   : > { %v477_v46 = vadd.f32 %v476_v27, %v473_v37  ;;  %v436_v48 = vmul.f32 %v434_v36, %v414_v31  ;;  %v1679_v54 = vpop.permute.xlu0 %589  ;;  %v446_v56 = vld [vmem:[#allocation2 + $0x1] ss:$2 sm:$0x7]  ;;  %v563_v11 = vmul.f32 %v562_v39, %v557_v47  ;;  %v535_v22 = vstv %s1610_s18  ;;  %s1709_s8 = sld [smem:[#allocation3 + $0x29]]  ;;  %s1381_s4 = smov 94  }
  0xf4   : > { %376 = vrot.lane.b32.xlu0 %v374_v32, %s1371_s20  ;;  %v342_v40 = vadd.f32 %v341_v34, %v338_v33  ;;  %v494_v61 = vld [vmem:[#allocation2 + $0x1] ss:$2 sm:$0x7]  ;;  %v397_v7 = vmul.f32 %v395_v52, %v389_v59  ;;  %v452_v9 = vmul.f32 %v451_v58, %v446_v56  ;;  %v625_v25 = vstv %s1600_s10  ;;  %s1712_s18 = sld [smem:[#allocation3 + $0x12]]  ;;  %s1376_s20 = smov 112  }
  0xf5   : > { %v484_v6 = vmul.f32 %v482_v53, %v477_v46  ;;  %v533_v13 = vld [vmem:[#allocation2 + $0x1] ss:$2 sm:$0x7]  ;;  %v515_v15 = vmul.f32 %v514_v63, %v494_v61  ;;  %v500_v29 = vmul.f32 %v499_v3, %v494_v61  ;;  %v564_v30 = vadd.f32 %v563_v11, %v560_v20  ;;  %s1716_s10 = sld [smem:[#allocation3 + $0x2b]]  ;;  %v1720_v39 = vpop.permute.xlu1 %676  ;;  %s1382_s23 = smov 95  }
  0xf6   : > { %v357_v49 = vmul.f32 %v355_v41, %v342_v40  ;;  %v453_v1 = vadd.f32 %v452_v9, %v449_v8  ;;  %v539_v26 = vmul.f32 %v538_v2, %v533_v13  ;;  %v543_v31 = vrot.slane %v1649_v28, 7  ;;  %v605_v34 = vld [vmem:[#allocation2 + $0x1] ss:$2 sm:$0x7] }
  0xf7   : > { %v1703_v23 = vpop.permute.xlu0 %652  ;;  %v516_v24 = vadd.f32 %v515_v15, %v512_v14  ;;  %v569_v33 = vsel %vm568_vm13, %v567_v18, %v1669_v45  ;;  %v536_v35 = vmul.f32 %v535_v22, %v532_v21  ;;  %v497_v36 = vmul.f32 %v496_v16, %v493_v60  ;;  %v581_v40 = vld [vmem:[#allocation2 + $0x1] ss:$2 sm:$0x7]  ;;  %v604_v44 = vld [vmem:[#allocation2] ss:$2 sm:$0x7] }
  0xf8   : > { %359 = vrot.lane.b32.xlu1 %v357_v49, %s1372_s27  ;;  %438 = vrot.lane.b32.xlu0 %v436_v48, %s1373_s28  ;;  %v460_v27 = vmul.f32 %v458_v10, %v453_v1  ;;  %v610_v37 = vstv %s1673_s5  ;;  %v583_v41 = vstv %s1655_s11  ;;  %v644_v46 = vld [vmem:[#allocation2 + $0x1] ss:$2 sm:$0x7]  ;;  %v571_v50 = vmul.f32 %v569_v33, %v564_v30  ;;  %v580_v52 = vld [vmem:[#allocation2] ss:$2 sm:$0x7] }
  0xf9   : > { %v523_v32 = vmul.f32 %v521_v17, %v516_v24  ;;  %v540_v45 = vadd.f32 %v539_v26, %v536_v35  ;;  %v649_v47 = vstv %s1663_s17  ;;  %v501_v48 = vadd.f32 %v500_v29, %v497_v36  ;;  %s1729_s11 = sld [smem:[#allocation3 + $0x14]]  ;;  %v643_v58 = vld [vmem:[#allocation2] ss:$2 sm:$0x7]  ;;  %s1379_s5 = smov 96   ;;  %v740_v8 = vpop.permute.xlu1 %739 }
  0xfa   : > { %v607_v49 = vstv %s1688_s1  ;;  %v545_v51 = vsel %vm544_vm14, %v543_v31, %v1649_v28  ;;  %v591_v53 = vrot.slane %v1679_v54, 7  ;;  %v611_v56 = vmul.f32 %v610_v37, %v605_v34  ;;  %s1733_s17 = sld [smem:[#allocation3 + $0x2d]]  ;;  %v692_v3 = vld [vmem:[#allocation2 + $0x1] ss:$2 sm:$0x7] }
  0xfb   : > { %v701_v55 = vpop.permute.xlu0 %700  ;;  %v587_v57 = vmul.f32 %v586_v42, %v581_v40  ;;  %v646_v59 = vstv %s1700_s0  ;;  %v654_v60 = vrot.slane %v1703_v23, 7  ;;  %v650_v28 = vmul.f32 %v649_v47, %v644_v46  ;;  %s1737_s27 = sld [smem:[#allocation3 + $0x13]]  ;;  %v691_v17 = vld [vmem:[#allocation2] ss:$2 sm:$0x7]  ;;  %s1380_s0 = smov 108  }
  0xfc   : > { %399 = vrot.lane.b32.xlu1 %v397_v7, %s1374_s29  ;;  %486 = vrot.lane.b32.xlu0 %v484_v6, %s1375_s6  ;;  %v694_v61 = vstv %s1705_s30  ;;  %v608_v62 = vmul.f32 %v607_v49, %v604_v44  ;;  %v626_v63 = vmul.f32 %v625_v25, %v605_v34  ;;  %v547_v0 = vmul.f32 %v545_v51, %v540_v45  ;;  %v668_v7 = vld [vmem:[#allocation2 + $0x1] ss:$2 sm:$0x7]  ;;  %s1742_s28 = sld [smem:[#allocation3 + $0x2a]] }
  0xfd   : > { %v584_v2 = vmul.f32 %v583_v41, %v580_v52  ;;  %v697_v5 = vstv %s1709_s8  ;;  %v630_v6 = vrot.slane %v1692_v12, 7  ;;  %v593_v9 = vsel %vm592_vm0, %v591_v53, %v1679_v54  ;;  %s1748_s1 = sld [smem:[#allocation3 + $0x2c]]  ;;  %v667_v54 = vld [vmem:[#allocation2] ss:$2 sm:$0x7] }
  0xfe   : > { %v647_v10 = vmul.f32 %v646_v59, %v643_v58  ;;  %v612_v11 = vadd.f32 %v611_v56, %v608_v62  ;;  %v623_v13 = vmul.f32 %v622_v19, %v604_v44  ;;  %v656_v15 = vsel %vm655_vm2, %v654_v60, %v1703_v23  ;;  %s1753_s29 = sld [smem:[#allocation3 + $0x11]]  ;;  %v716_v16 = vld [vmem:[#allocation2 + $0x1] ss:$2 sm:$0x7] }
  0xff   : > { %v588_v14 = vadd.f32 %v587_v57, %v584_v2  ;;  %v702_v18 = vrot.slane %v701_v55, 7  ;;  %v670_v1 = vstv %s1694_s2  ;;  %v698_v21 = vmul.f32 %v697_v5, %v692_v3  ;;  %v1751_v22 = vpop.permute.xlu0 %763  ;;  %s1758_s6 = sld [smem:[#allocation3 + $0x15]]  ;;  %v715_v33 = vld [vmem:[#allocation2] ss:$2 sm:$0x7] }
 0x100   : > { %462 = vrot.lane.b32.xlu1 %v460_v27, %s1376_s20  ;;  %525 = vrot.lane.b32.xlu0 %v523_v32, %s1377_s26  ;;  %v651_v20 = vadd.f32 %v650_v28, %v647_v10  ;;  %v627_v19 = vadd.f32 %v626_v63, %v623_v13  ;;  %v674_v23 = vmul.f32 %v673_v38, %v668_v7  ;;  %v736_v24 = vstv %s1716_s10  ;;  %s1763_s2 = sld [smem:[#allocation3 + $0x2e]]  ;;  %s1383_s10 = smov 92   ;;  %v779_v42 = vld [vmem:[#allocation2 + $0x1] ss:$2 sm:$0x7] }
 0x101   : > { %v595_v25 = vmul.f32 %v593_v9, %v588_v14  ;;  %v632_v26 = vsel %vm631_vm15, %v630_v6, %v1692_v12  ;;  %v678_v27 = vrot.slane %v1720_v39, 7  ;;  %v695_v30 = vmul.f32 %v694_v61, %v691_v17  ;;  %s1767_s30 = sld [smem:[#allocation3 + $0x2f]]  ;;  %v788_v12 = vpop.permute.xlu1 %787  ;;  %v778_v51 = vld [vmem:[#allocation2] ss:$2 sm:$0x7]  ;;  %s1384_s26 = smov 93  }
 0x102   : > { %v658_v29 = vmul.f32 %v656_v15, %v651_v20  ;;  %v671_v31 = vmul.f32 %v670_v1, %v667_v54  ;;  %v733_v32 = vstv %s1712_s18  ;;  %v741_v34 = vrot.slane %v740_v8, 7  ;;  %s1769_s8 = sld [smem:[#allocation3 + $0x31]]  ;;  %v754_v61 = vld [vmem:[#allocation2] ss:$2 sm:$0x7] }
 0x103   : > { %v704_v35 = vsel %vm703_vm3, %v702_v18, %v701_v55  ;;  %v737_v36 = vmul.f32 %v736_v24, %v716_v16  ;;  %v699_v37 = vadd.f32 %v698_v21, %v695_v30  ;;  %v634_v38 = vmul.f32 %v632_v26, %v627_v19  ;;  %s1772_s18 = sld [smem:[#allocation3 + $0x16]]  ;;  %v1776_v47 = vpop.permute.xlu0 %810  ;;  %v826_v2 = vld [vmem:[#allocation2 + $0x1] ss:$2 sm:$0x7] }
 0x104   : > { %503 = vrot.lane.b32.xlu1 %v501_v48, %s1378_s25  ;;  %573 = vrot.lane.b32.xlu0 %v571_v50, %s1379_s5  ;;  %v675_v40 = vadd.f32 %v674_v23, %v671_v31  ;;  %v784_v41 = vstv %s1733_s17  ;;  %v680_v44 = vsel %vm679_vm1, %v678_v27, %v1720_v39  ;;  %v734_v45 = vmul.f32 %v733_v32, %v715_v33  ;;  %s1781_s20 = sld [smem:[#allocation3 + $0x18]]  ;;  %v755_v39 = vld [vmem:[#allocation2 + $0x1] ss:$2 sm:$0x7]  ;;  %s1385_s17 = smov 79  }
 0x105   : > { %v706_v46 = vmul.f32 %v704_v35, %v699_v37  ;;  %v721_v48 = vstv %s1742_s28  ;;  %v743_v49 = vsel %vm742_vm4, %v741_v34, %v740_v8  ;;  %v781_v50 = vstv %s1729_s11  ;;  %s1783_s25 = sld [smem:[#allocation3 + $0x30]]  ;;  %s1386_s11 = smov 80   ;;  %v802_v8 = vld [vmem:[#allocation2 + $0x1] ss:$2 sm:$0x7]  ;;  %v850_v24 = vpop.permute.xlu1 %849 }
 0x106   : > { %v789_v52 = vrot.slane %v788_v12, 7  ;;  %v738_v53 = vadd.f32 %v737_v36, %v734_v45  ;;  %v785_v55 = vmul.f32 %v784_v41, %v779_v42  ;;  %v760_v56 = vstv %s1748_s1  ;;  %s1787_s5 = sld [smem:[#allocation3 + $0x17]]  ;;  %s1387_s28 = smov 77   ;;  %v825_v13 = vld [vmem:[#allocation2] ss:$2 sm:$0x7] }
 0x107   : > { %v718_v57 = vstv %s1753_s29  ;;  %v682_v58 = vmul.f32 %v680_v44, %v675_v40  ;;  %v722_v59 = vmul.f32 %v721_v48, %v716_v16  ;;  %v782_v28 = vmul.f32 %v781_v50, %v778_v51  ;;  %v865_v15 = vld [vmem:[#allocation2 + $0x1] ss:$2 sm:$0x7]  ;;  %v801_v21 = vld [vmem:[#allocation2] ss:$2 sm:$0x7] }
 0x108   : > { %549 = vrot.lane.b32.xlu1 %v547_v0, %s1380_s0  ;;  %614 = vrot.lane.b32.xlu0 %v612_v11, %s1381_s4  ;;  %v745_v60 = vmul.f32 %v743_v49, %v738_v53  ;;  %v757_v62 = vstv %s1737_s27  ;;  %v765_v63 = vrot.slane %v1751_v22, 7  ;;  %v791_v0 = vsel %vm790_vm5, %v789_v52, %v788_v12  ;;  %v874_v11 = vpop.permute.xlu0 %873  ;;  %v864_v26 = vld [vmem:[#allocation2] ss:$2 sm:$0x7]  ;;  %s1388_s27 = smov 78   ;;  %s1881_s1 = smov 64  }
 0x109   : > { %v761_v3 = vmul.f32 %v760_v56, %v755_v39  ;;  %v719_v5 = vmul.f32 %v718_v57, %v715_v33  ;;  %v831_v6 = vstv %s1767_s30  ;;  %v786_v7 = vadd.f32 %v785_v55, %v782_v28  ;;  %s1389_s0 = smov 76   ;;  %s1390_s4 = smov 62   ;;  %v306_v51 = vld [vmem:[#allocation2 + $0x1] ss:$2 sm:$0x3] }
 0x10a   : > { %v804_v9 = vstv %s1758_s6  ;;  %v807_v10 = vstv %s1763_s2  ;;  %v758_v14 = vmul.f32 %v757_v62, %v754_v61  ;;  %v870_v17 = vstv %s1769_s8  ;;  %s1391_s29 = smov 63   ;;  %s1392_s6 = smov 60   ;;  %v305_v52 = vld [vmem:[#allocation2] ss:$2 sm:$0x3] }
 0x10b   : > { %v723_v18 = vadd.f32 %v722_v59, %v719_v5  ;;  %v828_v1 = vstv %s1772_s18  ;;  %v793_v54 = vmul.f32 %v791_v0, %v786_v7  ;;  %v767_v20 = vsel %vm766_vm6, %v765_v63, %v1751_v22  ;;  %s1393_s2 = smov 61   ;;  %s307_s30 = sld [smem:[#allocation3]] }
 0x10c   : > { %597 = vrot.lane.b32.xlu1 %v595_v25, %s1382_s23  ;;  %660 = vrot.lane.b32.xlu0 %v658_v29, %s1383_s10  ;;  %v812_v19 = vrot.slane %v1776_v47, 7  ;;  %v832_v23 = vmul.f32 %v831_v6, %v826_v2  ;;  %v762_v16 = vadd.f32 %v761_v3, %v758_v14  ;;  %v808_v25 = vmul.f32 %v807_v10, %v802_v8  ;;  %s1029_s23 = sld [smem:[#allocation3 + $0x19]]  ;;  %s1085_s8 = sshll.u32 %s1436_s16, 7 }
 0x10d   : > { %v867_v27 = vstv %s1781_s20  ;;  %v875_v29 = vrot.slane %v874_v11, 7  ;;  %v846_v30 = vstv %s1783_s25  ;;  %v871_v31 = vmul.f32 %v870_v17, %v865_v15  ;;  %s1882_s10 = sshll.u32 %s1541_s21, 3 }
 0x10e   : > { %v829_v32 = vmul.f32 %v828_v1, %v825_v13  ;;  %v843_v22 = vstv %s1787_s5  ;;  %v769_v33 = vmul.f32 %v767_v20, %v762_v16  ;;  %v805_v34 = vmul.f32 %v804_v9, %v801_v21  ;;  %s211_s18 = scalar_lea.vmem [#allocation10], %s1882_s10  ;;  %s908_s5 = scalar_lea.sflag [#allocation5], %s1541_s21 }
 0x10f   : > { %v851_v35 = vrot.slane %v850_v24, 7  ;;  %v814_v36 = vsel %vm813_vm7, %v812_v19, %v1776_v47  ;;  %v868_v12 = vmul.f32 %v867_v27, %v864_v26  ;;  %v877_v41 = vsel %vm876_vm8, %v875_v29, %v874_v11  ;;  %s922_s20 = sshll.u32 %s211_s18, 4  ;;  %s923_s20 = int_to_ptr.vmem [resolvable:$true] %s922_s20 }
 0x110   : > { %636 = vrot.lane.b32.xlu1 %v634_v38, %s1384_s26  ;;  %708 = vrot.lane.b32.xlu0 %v706_v46, %s1385_s17  ;;  %v833_v37 = vadd.f32 %v832_v23, %v829_v32  ;;  %v847_v38 = vmul.f32 %v846_v30, %v826_v2  ;;  %v809_v40 = vadd.f32 %v808_v25, %v805_v34  ;;  %vm379_vm11 = vcmask 1031168   ;;  %s920_s17 = scalar_lea.hbm %s1851_s3, %s1085_s8 }
 0x111   : > { %v872_v42 = vadd.f32 %v871_v31, %v868_v12  ;;  %v844_v44 = vmul.f32 %v843_v22, %v825_v13  ;;  %v853_v46 = vsel %vm852_vm9, %v851_v35, %v850_v24  ;;  %v308_v53 = vstv %s307_s30 }
 0x112   : > { %v816_v45 = vmul.f32 %v814_v36, %v809_v40  ;;  %v311_v50 = vstv %s1029_s23  ;;  %v309_v56 = vmul.f32 %v308_v53, %v305_v52  ;;  %vm402_vm12 = vcmask 1022976  }
 0x113   : > { %v879_v48 = vmul.f32 %v877_v41, %v872_v42  ;;  %v848_v49 = vadd.f32 %v847_v38, %v844_v44  ;;  %v312_v55 = vmul.f32 %v311_v50, %v306_v51  ;;  %vm441_vm13 = vcmask 1014784  }
 0x114   : > { %684 = vrot.lane.b32.xlu1 %v682_v58, %s1386_s11  ;;  %747 = vrot.lane.b32.xlu0 %v745_v60, %s1387_s28  ;;  %vm465_vm14 = vcmask 916480   ;;  %vm489_vm15 = vcmask 908288   ;;  %vm506_vm0 = vcmask 900096   ;;  %vm528_vm1 = vcmask 891904   ;;  %s1272_s11 = scalar_lea.vmem %s923_s20, 128  ;;  %s1394_s28 = smov [#allocation10]  }
 0x115   : > { %v855_v47 = vmul.f32 %v853_v46, %v848_v49  ;;  %v313_v57 = vadd.f32 %v312_v55, %v309_v56  ;;  %vm552_vm2 = vcmask 883712   ;;  %vm576_vm3 = vcmask 785408   ;;  %p1273_p8 = scmp.ne.s32.totalorder %s923_s20, %s1272_s11  ;;  %s1276_s16 = sshll.u32 %s1394_s28, 4  ;;  %s1277_s16 = int_to_ptr.vmem [resolvable:$false] %s1276_s16 }
 0x116   : > { %vm600_vm4 = vcmask 777216   ;;  %vm617_vm6 = vcmask 769024   ;;  %vm639_vm7 = vcmask 760832   ;;  %vm663_vm8 = vcmask 752640   ;;  %p1279_p13 = scmp.lt.s32.totalorder %s923_s20, %s1277_s16 }
 0x117   : > { %v332_v61 = vmul.f32 %v1563_v43, %v313_v57  ;;  %vm687_vm9 = vcmask 654336   ;;  %p1274_p11 = pnand %p1273_p8, %p1883_p3 }
 0x118   : > { %725 = vrot.lane.b32.xlu1 %v723_v18, %s1388_s27  ;;  %795 = vrot.lane.b32.xlu0 %v793_v54, %s1881_s1  ;;  %s1278_s27 = scalar_lea.vmem %s1277_s16, 256 }
 0x119   : > { %p1275_p1 = pneg %p1274_p11  ;;  %p1280_p0 = scmp.lt.s32.totalorder %s1278_s27, %s1272_s11 }
 0x11b   : > { %p1281_p2 = por %p1280_p0, %p1279_p13 }
 0x11c   : > { %771 = vrot.lane.b32.xlu1 %v769_v33, %s1389_s0  ;;  %835 = vrot.lane.b32.xlu0 %v833_v37, %s1390_s4 }
 0x11d   : > { %p1282_p5 = pnand %p1281_p2, %p1275_p1 }
 0x120   : > { %818 = vrot.lane.b32.xlu1 %v816_v45, %s1391_s29  ;;  %881 = vrot.lane.b32.xlu0 %v879_v48, %s1392_s6 }
 0x124   : > { %857 = vrot.lane.b32.xlu1 %v855_v47, %s1393_s2 }
 0x166   : > { %v377_v39 = vpop.permute.xlu0 %376 }
 0x167   : > { %v378_v60 = vrot.slane %v377_v39, 1 }
 0x169   : > { %v380_v3 = vsel %vm379_vm11, %v377_v39, %v378_v60  ;;  %vm728_vm11 = vcmask 637952  }
 0x16a   : > { %v360_v58 = vpop.permute.xlu1 %359  ;;  %v439_v59 = vpop.permute.xlu0 %438 }
 0x16b   : > { %v361_v28 = vrot.slane %v360_v58, 1  ;;  %v440_v5 = vrot.slane %v439_v59, 1 }
 0x16d   : > { %v363_v62 = vsel %vm362_vm10, %v360_v58, %v361_v28  ;;  %v442_v11 = vsel %vm441_vm13, %v439_v59, %v440_v5  ;;  %vm711_vm10 = vcmask 646144   ;;  %vm774_vm13 = vcmask 621568  }
 0x16e   : > { %v365_v63 = vadd.f32 %v363_v62, %v332_v61  ;;  %v400_v0 = vpop.permute.xlu1 %399  ;;  %v487_v2 = vpop.permute.xlu0 %486 }
 0x16f   : > { %v401_v6 = vrot.slane %v400_v0, 1  ;;  %v488_v13 = vrot.slane %v487_v2, 1 }
 0x170   : > { %v382_v7 = vadd.f32 %v380_v3, %v365_v63 }
 0x171   : > { %v403_v8 = vsel %vm402_vm12, %v400_v0, %v401_v6  ;;  %v490_v54 = vsel %vm489_vm15, %v487_v2, %v488_v13  ;;  %vm750_vm12 = vcmask 629760   ;;  %vm838_vm15 = vcmask 506880  }
 0x172   : > { %v405_v9 = vadd.f32 %v403_v8, %v382_v7  ;;  %v463_v10 = vpop.permute.xlu1 %462  ;;  %v526_v15 = vpop.permute.xlu0 %525 }
 0x173   : > { %v464_v14 = vrot.slane %v463_v10, 1  ;;  %v527_v20 = vrot.slane %v526_v15, 1 }
 0x174   : > { %v444_v43 = vadd.f32 %v442_v11, %v405_v9 }
 0x175   : > { %v466_v17 = vsel %vm465_vm14, %v463_v10, %v464_v14  ;;  %v529_v26 = vsel %vm528_vm1, %v526_v15, %v527_v20  ;;  %vm821_vm14 = vcmask 515072   ;;  %vm884_vm1 = vcmask 490496  }
 0x176   : > { %v468_v18 = vadd.f32 %v466_v17, %v444_v43  ;;  %v504_v1 = vpop.permute.xlu1 %503  ;;  %v574_v19 = vpop.permute.xlu0 %573 }
 0x177   : > { %v505_v21 = vrot.slane %v504_v1, 1  ;;  %v575_v27 = vrot.slane %v574_v19, 1 }
 0x178   : > { %v492_v23 = vadd.f32 %v490_v54, %v468_v18 }
 0x179   : > { %v507_v24 = vsel %vm506_vm0, %v504_v1, %v505_v21  ;;  %v577_v34 = vsel %vm576_vm3, %v574_v19, %v575_v27  ;;  %vm860_vm0 = vcmask 498688  }
 0x17a   : > { %v509_v16 = vadd.f32 %v507_v24, %v492_v23  ;;  %v550_v25 = vpop.permute.xlu1 %549  ;;  %v615_v30 = vpop.permute.xlu0 %614 }
 0x17b   : > { %v551_v29 = vrot.slane %v550_v25, 1  ;;  %v616_v35 = vrot.slane %v615_v30, 1 }
 0x17c   : > { %v531_v31 = vadd.f32 %v529_v26, %v509_v16 }
 0x17d   : > { %v553_v32 = vsel %vm552_vm2, %v550_v25, %v551_v29  ;;  %v618_v42 = vsel %vm617_vm6, %v615_v30, %v616_v35 }
 0x17e   : > { %v555_v22 = vadd.f32 %v553_v32, %v531_v31  ;;  %v598_v33 = vpop.permute.xlu1 %597  ;;  %v661_v12 = vpop.permute.xlu0 %660  ;;  %v897_v31 = vsub.s32 0, %v1555_v4  ;;  %v901_v32 = vsub.s32 1, %v1555_v4 }
 0x17f   : > { %v599_v36 = vrot.slane %v598_v33, 1  ;;  %v662_v44 = vrot.slane %v661_v12, 1 }
 0x180   : > { %v579_v37 = vadd.f32 %v577_v34, %v555_v22 }
 0x181   : > { %v601_v38 = vsel %vm600_vm4, %v598_v33, %v599_v36  ;;  %v664_v51 = vsel %vm663_vm8, %v661_v12, %v662_v44  ;;  %v1206_v36 = vld [vmem:[%s1547_s22] sm:$0xff] }
 0x182   : > { %v603_v40 = vadd.f32 %v601_v38, %v579_v37  ;;  %v637_v41 = vpop.permute.xlu1 %636  ;;  %v709_v46 = vpop.permute.xlu0 %708 }
 0x183   : > { %v638_v45 = vrot.slane %v637_v41, 1  ;;  %v710_v52 = vrot.slane %v709_v46, 1 }
 0x184   : > { %v620_v48 = vadd.f32 %v618_v42, %v603_v40 }
 0x185   : > { %v640_v49 = vsel %vm639_vm7, %v637_v41, %v638_v45  ;;  %v712_v59 = vsel %vm711_vm10, %v709_v46, %v710_v52 }
 0x186   : > { %v642_v47 = vadd.f32 %v640_v49, %v620_v48  ;;  %v685_v50 = vpop.permute.xlu1 %684  ;;  %v748_v55 = vpop.permute.xlu0 %747 }
 0x187   : > { %v686_v53 = vrot.slane %v685_v50, 1  ;;  %v749_v60 = vrot.slane %v748_v55, 1 }
 0x188   : > { %v666_v39 = vadd.f32 %v664_v51, %v642_v47 }
 0x189   : > { %v688_v56 = vsel %vm687_vm9, %v685_v50, %v686_v53  ;;  %v751_v3 = vsel %vm750_vm12, %v748_v55, %v749_v60 }
 0x18a   : > { %v690_v57 = vadd.f32 %v688_v56, %v666_v39  ;;  %v726_v58 = vpop.permute.xlu1 %725  ;;  %v796_v61 = vpop.permute.xlu0 %795 }
 0x18b   : > { %v727_v28 = vrot.slane %v726_v58, 1  ;;  %v797_v5 = vrot.slane %v796_v61, 1 }
 0x18c   : > { %v714_v62 = vadd.f32 %v712_v59, %v690_v57 }
 0x18d   : > { %v729_v63 = vsel %vm728_vm11, %v726_v58, %v727_v28  ;;  %v798_v13 = vsel %vm790_vm5, %v796_v61, %v797_v5 }
 0x18e   : > { %v731_v0 = vadd.f32 %v729_v63, %v714_v62  ;;  %v772_v2 = vpop.permute.xlu1 %771  ;;  %v836_v7 = vpop.permute.xlu0 %835 }
 0x18f   : > { %v773_v6 = vrot.slane %v772_v2, 1  ;;  %v837_v14 = vrot.slane %v836_v7, 1 }
 0x190   : > { %v753_v8 = vadd.f32 %v751_v3, %v731_v0 }
 0x191   : > { %v775_v9 = vsel %vm774_vm13, %v772_v2, %v773_v6  ;;  %v839_v20 = vsel %vm838_vm15, %v836_v7, %v837_v14 }
 0x192   : > { %v777_v10 = vadd.f32 %v775_v9, %v753_v8  ;;  %v819_v11 = vpop.permute.xlu1 %818  ;;  %v882_v17 = vpop.permute.xlu0 %881 }
 0x193   : > { %v820_v15 = vrot.slane %v819_v11, 1  ;;  %v883_v21 = vrot.slane %v882_v17, 1 }
 0x194   : > { %v800_v43 = vadd.f32 %v798_v13, %v777_v10 }
 0x195   : > { %v822_v18 = vsel %vm821_vm14, %v819_v11, %v820_v15  ;;  %v885_v25 = vsel %vm884_vm1, %v882_v17, %v883_v21 }
 0x196   : > { %v824_v1 = vadd.f32 %v822_v18, %v800_v43  ;;  %v858_v54 = vpop.permute.xlu1 %857 }
 0x197   : > { %v859_v19 = vrot.slane %v858_v54, 1 }
 0x198   : > { %v841_v23 = vadd.f32 %v839_v20, %v824_v1 }
 0x199   : > { %v861_v24 = vsel %vm860_vm0, %v858_v54, %v859_v19 }
 0x19a   : > { %v863_v16 = vadd.f32 %v861_v24, %v841_v23 }
 0x19c   : > { %v887_v26 = vadd.f32 %v885_v25, %v863_v16 }
 0x19e   : > { %v1078_v27 = vmul.f32 -1.442695, %v887_v26 }
 0x1a0   : > { %1202 = vpow2.f32 %v1078_v27 }
 0x1ad   : > { %v1203_v29 = vpop.eup %1202 }
 0x1ae   : > { %v891_v30 = vadd.f32 1.0, %v1203_v29 }
 0x1b0   : > { %1204 = vrcp.f32 %v891_v30 }
 0x1bd   : > { %v1205_v22 = vpop.eup %1204 }
 0x1be   : > { %v898_v33 = vrot.slane %v1205_v22, %v897_v31  ;;  %v902_v34 = vrot.slane %v1205_v22, %v901_v32 }
 0x1c0   : > { %v903_v35 = vcombine.low %v898_v33, %v902_v34 }
 0x1c2   : > { %v905_v12 = vmul.f32 %v1206_v36, %v903_v35 }
 0x1c4   : > { %906 = vst [vmem:[%s211_s18] sm:$0xff] %v905_v12 }
 0x1c5   : > { %1285 = shalt.err (!%p1282_p5)
}
 0x1c6   : > { %s1286_s22 = scalar_lea.hbm %s920_s17, 128  ;;  %s1290_s0 = scalar_lea.hbm %s1851_s3, 256 }
 0x1c7   : > { %p1287_p7 = scmp.ne.s32.totalorder %s920_s17, %s1286_s22  ;;  %p1291_p12 = scmp.lt.s32.totalorder %s920_s17, %s1851_s3 }
 0x1c8   : > { %p1292_p9 = scmp.lt.s32.totalorder %s1290_s0, %s1286_s22 }
 0x1c9   : > { %p1288_p10 = pnand %p1287_p7, %p1883_p3 }
 0x1ca   : > { %p1293_p4 = por %p1292_p9, %p1291_p12 }
 0x1cb   : > { %p1289_p6 = pneg %p1288_p10 }
 0x1cd   : > { %p1294_p8 = pnand %p1293_p4, %p1289_p6 }
 0x1cf   : > { %1297 = shalt.err (!%p1294_p8)
}
 0x1d0   : > { %1096 = dma.vmem_to_hbm [thread:$0]  (%p1883_p3), %s923_s20, 128, %s920_s17, %s908_s5  }
 0x1d1 PF: > { %s934_s6 = sand.u32 1, %s1332_s12   ;;  %p1884_p11 = scmp.ne.s32.totalorder %s1862_s19, 0 }
 0x1d2   : > { %p1885_p1 = scmp.ge.s32.totalorder %s1344_s15, 2  ;;  %s935_s2 = scalar_lea.sflag [#allocation5], %s934_s6 }
 0x1d4   : > { %p1110_p13 = pnand %p1885_p1, %p1884_p11 }
 0x1d6   : > { %p1111_p0 = pneg %p1110_p13 }
 0x1d8   : > { %1327 = dma.done.wait (%p1111_p0), %s935_s2, 128  }
 0x1d9   : > { %1329 = vsyncadd (%p1111_p0), %s935_s2, 4294967168  ;;  %p18_p2 = scmp.ge.s32.totalorder %s1469_s24, 4   ;;  %s1886_s12 = smov %s1336_s13 }
 0x1da   : > { %s1887_s13 = smov %s1340_s14  ;;  %s1888_s14 = smov %s1493_s7 }
 0x1db   : > { %s1889_s15 = smov %s1469_s24  ;;  %20 = sbr.rel (!%p18_p2) target bundleno = 11 (0xb), region = 88 }
 0x1e0   :  { %940 = vsyncpa [#allocation4], 1 }
 0x1e1   :  { %942 = vsyncpa [#allocation4 + $0x1], 1 }
 0x1e2   :  { %943 = vsyncpa [#allocation9], 1 }
 0x1e3   :  { %945 = vsyncpa [#allocation9 + $0x1], 1 }
 0x1e4   :  { %946 = vsyncpa [#allocation5], 1 }
 0x1e5   :  { %948 = vsyncpa [#allocation5 + $0x1], 1 }
 0x1e6   :  { %949 = vsyncpa [#allocation6], 1 }
 0x1e7   :  { %951 = vsyncpa [#allocation6 + $0x1], 1 }

</bundles_post_ra>
